<compile_context>
chip_gen: v5e
topology: v5e:2x2
jax: 0.10.0
libtpu: 0.0.40
codegen_flags: <defaults>
</compile_context>

<pallas_src>
import numpy as np

import jax
import jax.numpy as jnp
from jax import lax
from jax.experimental import pallas as pl
from jax.experimental.pallas import tpu as pltpu

# ---------------------------------------------------------------------------
# Static LeNet geometry
# ---------------------------------------------------------------------------
H0 = W0 = 28          # input spatial
K = 5                 # conv kernel size
PW1 = 12              # pooled conv1 width
PW2 = 4               # pooled conv2 width
PH2 = 4               # pooled conv2 height
C1 = 6                # conv1 out channels (real)
C1P = 8               # conv1 out channels (lane padded)
C2 = 16               # conv2 out channels
NUM_CLASSES = 10
HALF = 128            # lane width of each even / odd half (vreg aligned)
FC_PAD = 128          # padded fc width (lane dense)
PITCH1 = 32           # per-image row pitch of the stacked input (28 rows + 4 zero)
PITCH2 = 8            # per-image row pitch of the pooled conv2 activation
TB_MAX = 64           # images per grid step


# ---------------------------------------------------------------------------
# The fused kernel
# ---------------------------------------------------------------------------
def _lenet_kernel(x_ref, w1_ref, b1_ref, w2_ref, b2_ref,
                  fw1_ref, fb1_ref, fw2_ref, fb2_ref, fw3_ref, fb3_ref,
                  o_ref, h1_scr, p1_scr, h2_scr, p2_scr):
    """One grid step = TB images.

    x_ref  : (TB*32, 28) bf16      stacked images, 32-row pitch, rows 28..31 zero
    w1_ref : (5, 28, 256) bf16     banded conv1 weights, even cols in lanes 0..127,
                                   odd cols in lanes 128..255
    b1_ref : (1, 128) f32
    w2_ref : (5, 128, 256) bf16    banded conv2 weights (same even/odd split)
    b2_ref : (1, 128) f32
    fw1_ref: (4, 128, 128) bf16    fc1 split over the 4 pooled rows per image
    fw2_ref/fw3_ref: (128,128) bf16, fb*: (1,128) f32
    o_ref  : (TB, 128) f32         log_softmax logits (lanes 0..9 real)
    scratch: h1 (TB*32,128) f32, p1 (TB*16,128) f32, h2 (TB*16,128) f32,
             p2 (TB*8,128) f32
    """
    bf16 = jnp.bfloat16
    TB = o_ref.shape[0]
    R1 = TB * PITCH1 - 8            # conv1 output rows (stacked, incl. garbage rows)
    HP1 = TB * (PITCH1 // 2) - 4    # pooled conv1 rows (pitch 16/image)
    R2 = TB * (PITCH1 // 2) - 8     # conv2 output rows
    HP2 = TB * PITCH2 - 4           # pooled conv2 rows (pitch 8/image)

    # ---- conv1: 5 banded matmuls, merged even|odd output columns -------------
    acc1 = jnp.dot(x_ref[0:R1, :], w1_ref[0], preferred_element_type=jnp.float32)
    for di in range(1, K):
        acc1 += jnp.dot(x_ref[di:di + R1, :], w1_ref[di],
                        preferred_element_type=jnp.float32)
    # horizontal pool (even vs odd columns are the two 128-lane halves)
    h1 = jnp.maximum(acc1[:, :HALF], acc1[:, HALF:])
    h1 = jnp.maximum(h1 + b1_ref[...], 0.0)                     # bias + ReLU
    h1_scr[0:R1, :] = h1
    # vertical pool: one max over stride-2 row loads
    p1 = jnp.maximum(h1_scr[pl.ds(0, HP1, stride=2), :],
                     h1_scr[pl.ds(1, HP1, stride=2), :])
    p1_scr[0:HP1, :] = p1

    # ---- conv2: 5 banded matmuls ---------------------------------------------
    acc2 = jnp.dot(p1_scr[0:R2, :].astype(bf16), w2_ref[0],
                   preferred_element_type=jnp.float32)
    for di in range(1, K):
        acc2 += jnp.dot(p1_scr[di:di + R2, :].astype(bf16), w2_ref[di],
                        preferred_element_type=jnp.float32)
    h2 = jnp.maximum(acc2[:, :HALF], acc2[:, HALF:])
    h2 = jnp.maximum(h2 + b2_ref[...], 0.0)
    h2_scr[0:R2, :] = h2
    p2 = jnp.maximum(h2_scr[pl.ds(0, HP2, stride=2), :],
                     h2_scr[pl.ds(1, HP2, stride=2), :])
    p2_scr[0:HP2, :] = p2

    # ---- classifier: fc1 banded over the 4 pooled rows, fc2, fc3, log_softmax -
    z = jnp.dot(p2_scr[pl.ds(0, TB, stride=PITCH2), :].astype(bf16), fw1_ref[0],
                preferred_element_type=jnp.float32)
    for q in range(1, PH2):
        z += jnp.dot(p2_scr[pl.ds(q, TB, stride=PITCH2), :].astype(bf16),
                     fw1_ref[q], preferred_element_type=jnp.float32)
    z = jnp.maximum(z + fb1_ref[...], 0.0)
    z = jnp.dot(z.astype(bf16), fw2_ref[...],
                preferred_element_type=jnp.float32) + fb2_ref[...]
    z = jnp.maximum(z, 0.0)
    z = jnp.dot(z.astype(bf16), fw3_ref[...],
                preferred_element_type=jnp.float32) + fb3_ref[...]
    # masked log_softmax over the 10 real classes (lanes 10..127 are padding)
    col = lax.broadcasted_iota(jnp.int32, z.shape, 1)
    zm = jnp.where(col < NUM_CLASSES, z, -jnp.inf)
    m = jnp.max(zm, axis=-1, keepdims=True)
    lse = jnp.log(jnp.sum(jnp.exp(zm - m), axis=-1, keepdims=True))
    o_ref[...] = (z - m - lse).astype(o_ref.dtype)


# ---------------------------------------------------------------------------
# Forward pass wrapper
# ---------------------------------------------------------------------------
@jax.jit
def lenet_forward(x_nchw, kp):
    N = x_nchw.shape[0]
    TB = min(TB_MAX, N)
    G = pl.cdiv(N, TB)
    N_pad = G * TB

    # bf16 input, stacked (N_pad*32, 28): 32-row pitch/image, rows 28..31 zero.
    x = x_nchw.reshape(N, H0, W0).astype(jnp.bfloat16)
    x = jnp.pad(x, ((0, N_pad - N), (0, PITCH1 - H0), (0, 0)))
    x = x.reshape(N_pad * PITCH1, W0)

    out = pl.pallas_call(
        _lenet_kernel,
        out_shape=jax.ShapeDtypeStruct((N_pad, FC_PAD), jnp.float32),
        grid_spec=pltpu.PrefetchScalarGridSpec(
            num_scalar_prefetch=0,
            grid=(G,),
            in_specs=[
                pl.BlockSpec((TB * PITCH1, W0), lambda i: (i, 0)),
                pl.BlockSpec((K, W0, 2 * HALF), lambda i: (0, 0, 0)),
                pl.BlockSpec((1, HALF), lambda i: (0, 0)),
                pl.BlockSpec((K, HALF, 2 * HALF), lambda i: (0, 0, 0)),
                pl.BlockSpec((1, HALF), lambda i: (0, 0)),
                pl.BlockSpec((PH2, HALF, FC_PAD), lambda i: (0, 0, 0)),
                pl.BlockSpec((1, FC_PAD), lambda i: (0, 0)),
                pl.BlockSpec((FC_PAD, FC_PAD), lambda i: (0, 0)),
                pl.BlockSpec((1, FC_PAD), lambda i: (0, 0)),
                pl.BlockSpec((FC_PAD, FC_PAD), lambda i: (0, 0)),
                pl.BlockSpec((1, FC_PAD), lambda i: (0, 0)),
            ],
            out_specs=pl.BlockSpec((TB, FC_PAD), lambda i: (i, 0)),
            scratch_shapes=[
                pltpu.VMEM((TB * PITCH1, HALF), jnp.float32),       # h1
                pltpu.VMEM((TB * (PITCH1 // 2), HALF), jnp.float32),  # pooled1
                pltpu.VMEM((TB * (PITCH1 // 2), HALF), jnp.float32),  # h2
                pltpu.VMEM((TB * PITCH2, HALF), jnp.float32),        # pooled2
            ],
        ),
        compiler_params=pltpu.CompilerParams(
            dimension_semantics=("parallel",),
            vmem_limit_bytes=32 * 1024 * 1024,
        ),
    )(x, kp["w1m"], kp["b1t"], kp["w2m"], kp["b2t"],
      kp["fw1"], kp["fb1"], kp["fw2"], kp["fb2"], kp["fw3"], kp["fb3"])

    return out[:N, :NUM_CLASSES]


# ---------------------------------------------------------------------------
# Parameters (PyTorch layouts) and one-time kernel-layout preparation
# ---------------------------------------------------------------------------
def init_params(key):
    def uniform(k, shape, fan_in):
        bound = 1.0 / jnp.sqrt(float(fan_in))
        return jax.random.uniform(k, shape, jnp.float32, -bound, bound)

    ks = jax.random.split(key, 10)
    return {
        "conv1_w": uniform(ks[0], (6, 1, 5, 5), 25),
        "conv1_b": uniform(ks[1], (6,), 25),
        "conv2_w": uniform(ks[2], (16, 6, 5, 5), 150),
        "conv2_b": uniform(ks[3], (16,), 150),
        "fc1_w": uniform(ks[4], (120, 256), 256),   # PyTorch Linear: (out, in)
        "fc1_b": uniform(ks[5], (120,), 256),
        "fc2_w": uniform(ks[6], (84, 120), 120),
        "fc2_b": uniform(ks[7], (84,), 120),
        "fc3_w": uniform(ks[8], (10, 84), 84),
        "fc3_b": uniform(ks[9], (10,), 84),
    }


def prepare_params(p):
    """One-time host-side conversion of PyTorch-layout weights into the merged
    banded / padded / permuted operands the kernel consumes."""
    w1 = np.asarray(p["conv1_w"], np.float32)        # (6,1,5,5)
    b1 = np.asarray(p["conv1_b"], np.float32)
    w2 = np.asarray(p["conv2_w"], np.float32)        # (16,6,5,5)
    b2 = np.asarray(p["conv2_b"], np.float32)

    # conv1 banded weights, even|odd output columns merged: (5, 28, 256)
    #   even half lane = pw*8 + c (pw in 0..11), odd half at lane 128 + pw*8 + c
    w1m = np.zeros((K, W0, 2 * HALF), np.float32)
    for di in range(K):
        for pw in range(PW1):
            for dj in range(K):
                for c in range(C1):
                    w1m[di, 2 * pw + dj, pw * C1P + c] = w1[c, 0, di, dj]
                    w1m[di, 2 * pw + 1 + dj, HALF + pw * C1P + c] = w1[c, 0, di, dj]
    b1t = np.zeros((1, HALF), np.float32)
    for pw in range(PW1):
        b1t[0, pw * C1P:pw * C1P + C1] = b1

    # conv2 banded weights, even|odd merged: (5, 128, 256)
    #   contraction lane = (col)*8 + ci over the pooled conv1 layout
    w2m = np.zeros((K, HALF, 2 * HALF), np.float32)
    for di in range(K):
        for pw in range(PW2):
            for dj in range(K):
                for ci in range(C1):
                    for co in range(C2):
                        w2m[di, (2 * pw + dj) * C1P + ci, pw * C2 + co] = w2[co, ci, di, dj]
                        w2m[di, (2 * pw + 1 + dj) * C1P + ci, HALF + pw * C2 + co] = w2[co, ci, di, dj]
    b2t = np.zeros((1, HALF), np.float32)
    for pw in range(PW2):
        b2t[0, pw * C2:(pw + 1) * C2] = b2

    # fc1 split over the 4 pooled rows q; folds PyTorch's NCHW flatten
    # (idx = c*16 + h*4 + w) onto our pooled-conv2 lane layout (lane = w*16 + c).
    fc1_w = np.asarray(p["fc1_w"], np.float32)       # (120, 256)
    fw1 = np.zeros((PH2, HALF, FC_PAD), np.float32)
    for q in range(PH2):
        for w in range(PW2):
            for c in range(C2):
                fw1[q, w * C2 + c, :120] = fc1_w[:, c * 16 + q * 4 + w]
    fb1 = np.zeros((1, FC_PAD), np.float32)
    fb1[0, :120] = np.asarray(p["fc1_b"], np.float32)

    fw2 = np.zeros((FC_PAD, FC_PAD), np.float32)
    fw2[:120, :84] = np.asarray(p["fc2_w"], np.float32).T
    fb2 = np.zeros((1, FC_PAD), np.float32)
    fb2[0, :84] = np.asarray(p["fc2_b"], np.float32)

    fw3 = np.zeros((FC_PAD, FC_PAD), np.float32)
    fw3[:84, :NUM_CLASSES] = np.asarray(p["fc3_w"], np.float32).T
    fb3 = np.zeros((1, FC_PAD), np.float32)
    fb3[0, :NUM_CLASSES] = np.asarray(p["fc3_b"], np.float32)

    bf16 = jnp.bfloat16
    return {
        "w1m": jnp.asarray(w1m, bf16), "b1t": jnp.asarray(b1t),
        "w2m": jnp.asarray(w2m, bf16), "b2t": jnp.asarray(b2t),
        "fw1": jnp.asarray(fw1, bf16), "fb1": jnp.asarray(fb1),
        "fw2": jnp.asarray(fw2, bf16), "fb2": jnp.asarray(fb2),
        "fw3": jnp.asarray(fw3, bf16), "fb3": jnp.asarray(fb3),
    }


# ---------------------------------------------------------------------------
# Pure-JAX reference (mirrors the PyTorch module; bf16 matmul/conv operands,
# f32 accumulation -- same numerics regime as the kernel)
# ---------------------------------------------------------------------------
def lenet_reference(x_nchw, p):
    bf16 = jnp.bfloat16
    y = lax.conv_general_dilated(
        x_nchw.astype(bf16), p["conv1_w"].astype(bf16), (1, 1), "VALID",
        dimension_numbers=("NCHW", "OIHW", "NCHW"),
        preferred_element_type=jnp.float32)
    y = jax.nn.relu(y + p["conv1_b"].reshape(1, 6, 1, 1))
    y = lax.reduce_window(y, -jnp.inf, lax.max, (1, 1, 2, 2), (1, 1, 2, 2), "VALID")
    y = lax.conv_general_dilated(
        y.astype(bf16), p["conv2_w"].astype(bf16), (1, 1), "VALID",
        dimension_numbers=("NCHW", "OIHW", "NCHW"),
        preferred_element_type=jnp.float32)
    y = jax.nn.relu(y + p["conv2_b"].reshape(1, 16, 1, 1))
    y = lax.reduce_window(y, -jnp.inf, lax.max, (1, 1, 2, 2), (1, 1, 2, 2), "VALID")
    y = y.reshape(y.shape[0], 256)
    y = jax.nn.relu(jnp.dot(y.astype(bf16), p["fc1_w"].T.astype(bf16),
                            preferred_element_type=jnp.float32) + p["fc1_b"])
    y = jax.nn.relu(jnp.dot(y.astype(bf16), p["fc2_w"].T.astype(bf16),
                            preferred_element_type=jnp.float32) + p["fc2_b"])
    y = jnp.dot(y.astype(bf16), p["fc3_w"].T.astype(bf16),
                preferred_element_type=jnp.float32) + p["fc3_b"]
    return jax.nn.log_softmax(y, axis=-1)


if __name__ == "__main__":
    key = jax.random.PRNGKey(0)
    k_x, k_p = jax.random.split(key)
    # LeNet's classifier (Linear(256, .)) implies 28x28 single-channel input.
    x = jax.random.normal(k_x, (2, 1, 28, 28), jnp.float32)
    params = init_params(k_p)
    kparams = prepare_params(params)

    out = jax.block_until_ready(lenet_forward(x, kparams))

    assert out.shape == (2, 10)
    # log_softmax rows must sum to ~1 in probability space
    assert jnp.allclose(jnp.sum(jnp.exp(out), axis=1), 1.0, atol=1e-3)
    # match the straight JAX/XLA LeNet reference
    ref = lenet_reference(x, params)
    assert float(jnp.max(jnp.abs(out - ref))) < 3e-2, "mismatch vs reference"
    print("KERNEL_OK")
</pallas_src>

<mosaic_0001>
module attributes {stable_mosaic.version = 11 : i64} {
  func.func @_lenet_kernel(%arg0: i32, %arg1: memref<64x28xbf16, #tpu.memory_space<vmem>>, %arg2: memref<5x28x256xbf16, #tpu.memory_space<vmem>>, %arg3: memref<1x128xf32, #tpu.memory_space<vmem>>, %arg4: memref<5x128x256xbf16, #tpu.memory_space<vmem>>, %arg5: memref<1x128xf32, #tpu.memory_space<vmem>>, %arg6: memref<4x128x128xbf16, #tpu.memory_space<vmem>>, %arg7: memref<1x128xf32, #tpu.memory_space<vmem>>, %arg8: memref<128x128xbf16, #tpu.memory_space<vmem>>, %arg9: memref<1x128xf32, #tpu.memory_space<vmem>>, %arg10: memref<128x128xbf16, #tpu.memory_space<vmem>>, %arg11: memref<1x128xf32, #tpu.memory_space<vmem>>, %arg12: memref<2x128xf32, #tpu.memory_space<vmem>>, %arg13: memref<64x128xf32, #tpu.memory_space<vmem>>, %arg14: memref<32x128xf32, #tpu.memory_space<vmem>>, %arg15: memref<32x128xf32, #tpu.memory_space<vmem>>, %arg16: memref<16x128xf32, #tpu.memory_space<vmem>>) attributes {dimension_semantics = [#tpu.dimension_semantics<parallel>], iteration_bounds = array<i64: 1>, scalar_prefetch = 0 : i64, scratch_operands = 4 : i64, tpu.core_type = #tpu.core_type<tc>, window_params = [{transform_indices = @transform_0, window_bounds = array<i64: 64, 28>}, {pipeline_mode = #tpu.pipeline_mode<synchronous>, transform_indices = @transform_1, window_bounds = array<i64: 5, 28, 256>}, {pipeline_mode = #tpu.pipeline_mode<synchronous>, transform_indices = @transform_2, window_bounds = array<i64: 1, 128>}, {pipeline_mode = #tpu.pipeline_mode<synchronous>, transform_indices = @transform_3, window_bounds = array<i64: 5, 128, 256>}, {pipeline_mode = #tpu.pipeline_mode<synchronous>, transform_indices = @transform_4, window_bounds = array<i64: 1, 128>}, {pipeline_mode = #tpu.pipeline_mode<synchronous>, transform_indices = @transform_5, window_bounds = array<i64: 4, 128, 128>}, {pipeline_mode = #tpu.pipeline_mode<synchronous>, transform_indices = @transform_6, window_bounds = array<i64: 1, 128>}, {pipeline_mode = #tpu.pipeline_mode<synchronous>, transform_indices = @transform_7, window_bounds = array<i64: 128, 128>}, {pipeline_mode = #tpu.pipeline_mode<synchronous>, transform_indices = @transform_8, window_bounds = array<i64: 1, 128>}, {pipeline_mode = #tpu.pipeline_mode<synchronous>, transform_indices = @transform_9, window_bounds = array<i64: 128, 128>}, {pipeline_mode = #tpu.pipeline_mode<synchronous>, transform_indices = @transform_10, window_bounds = array<i64: 1, 128>}, {transform_indices = @transform_11, window_bounds = array<i64: 2, 128>}]} {
    %c0 = arith.constant 0 : index
    %c0_0 = arith.constant 0 : index
    %0 = vector.load %arg1[%c0, %c0_0] : memref<64x28xbf16, #tpu.memory_space<vmem>>, vector<56x28xbf16>
    %c0_1 = arith.constant 0 : index
    %c0_2 = arith.constant 0 : index
    %c0_3 = arith.constant 0 : index
    %1 = vector.load %arg2[%c0_1, %c0_2, %c0_3] : memref<5x28x256xbf16, #tpu.memory_space<vmem>>, vector<1x28x256xbf16>
    %2 = vector.shape_cast %1 : vector<1x28x256xbf16> to vector<28x256xbf16>
    %cst = arith.constant dense<0.000000e+00> : vector<56x256xf32>
    %3 = tpu.matmul %0, %2, %cst {dimension_numbers = #tpu.dot_dimension_numbers<[1], [0], [0], [1], [0, 0, 1, 1], [], []>} : vector<56x28xbf16>, vector<28x256xbf16>, vector<56x256xf32> -> vector<56x256xf32>
    %c1 = arith.constant 1 : index
    %c0_4 = arith.constant 0 : index
    %4 = vector.load %arg1[%c1, %c0_4] : memref<64x28xbf16, #tpu.memory_space<vmem>>, vector<56x28xbf16>
    %c1_5 = arith.constant 1 : index
    %c0_6 = arith.constant 0 : index
    %c0_7 = arith.constant 0 : index
    %5 = vector.load %arg2[%c1_5, %c0_6, %c0_7] : memref<5x28x256xbf16, #tpu.memory_space<vmem>>, vector<1x28x256xbf16>
    %6 = vector.shape_cast %5 : vector<1x28x256xbf16> to vector<28x256xbf16>
    %cst_8 = arith.constant dense<0.000000e+00> : vector<56x256xf32>
    %7 = tpu.matmul %4, %6, %cst_8 {dimension_numbers = #tpu.dot_dimension_numbers<[1], [0], [0], [1], [0, 0, 1, 1], [], []>} : vector<56x28xbf16>, vector<28x256xbf16>, vector<56x256xf32> -> vector<56x256xf32>
    %8 = arith.addf %3, %7 : vector<56x256xf32>
    %c2 = arith.constant 2 : index
    %c0_9 = arith.constant 0 : index
    %9 = vector.load %arg1[%c2, %c0_9] : memref<64x28xbf16, #tpu.memory_space<vmem>>, vector<56x28xbf16>
    %c2_10 = arith.constant 2 : index
    %c0_11 = arith.constant 0 : index
    %c0_12 = arith.constant 0 : index
    %10 = vector.load %arg2[%c2_10, %c0_11, %c0_12] : memref<5x28x256xbf16, #tpu.memory_space<vmem>>, vector<1x28x256xbf16>
    %11 = vector.shape_cast %10 : vector<1x28x256xbf16> to vector<28x256xbf16>
    %cst_13 = arith.constant dense<0.000000e+00> : vector<56x256xf32>
    %12 = tpu.matmul %9, %11, %cst_13 {dimension_numbers = #tpu.dot_dimension_numbers<[1], [0], [0], [1], [0, 0, 1, 1], [], []>} : vector<56x28xbf16>, vector<28x256xbf16>, vector<56x256xf32> -> vector<56x256xf32>
    %13 = arith.addf %8, %12 : vector<56x256xf32>
    %c3 = arith.constant 3 : index
    %c0_14 = arith.constant 0 : index
    %14 = vector.load %arg1[%c3, %c0_14] : memref<64x28xbf16, #tpu.memory_space<vmem>>, vector<56x28xbf16>
    %c3_15 = arith.constant 3 : index
    %c0_16 = arith.constant 0 : index
    %c0_17 = arith.constant 0 : index
    %15 = vector.load %arg2[%c3_15, %c0_16, %c0_17] : memref<5x28x256xbf16, #tpu.memory_space<vmem>>, vector<1x28x256xbf16>
    %16 = vector.shape_cast %15 : vector<1x28x256xbf16> to vector<28x256xbf16>
    %cst_18 = arith.constant dense<0.000000e+00> : vector<56x256xf32>
    %17 = tpu.matmul %14, %16, %cst_18 {dimension_numbers = #tpu.dot_dimension_numbers<[1], [0], [0], [1], [0, 0, 1, 1], [], []>} : vector<56x28xbf16>, vector<28x256xbf16>, vector<56x256xf32> -> vector<56x256xf32>
    %18 = arith.addf %13, %17 : vector<56x256xf32>
    %c4 = arith.constant 4 : index
    %c0_19 = arith.constant 0 : index
    %19 = vector.load %arg1[%c4, %c0_19] : memref<64x28xbf16, #tpu.memory_space<vmem>>, vector<56x28xbf16>
    %c4_20 = arith.constant 4 : index
    %c0_21 = arith.constant 0 : index
    %c0_22 = arith.constant 0 : index
    %20 = vector.load %arg2[%c4_20, %c0_21, %c0_22] : memref<5x28x256xbf16, #tpu.memory_space<vmem>>, vector<1x28x256xbf16>
    %21 = vector.shape_cast %20 : vector<1x28x256xbf16> to vector<28x256xbf16>
    %cst_23 = arith.constant dense<0.000000e+00> : vector<56x256xf32>
    %22 = tpu.matmul %19, %21, %cst_23 {dimension_numbers = #tpu.dot_dimension_numbers<[1], [0], [0], [1], [0, 0, 1, 1], [], []>} : vector<56x28xbf16>, vector<28x256xbf16>, vector<56x256xf32> -> vector<56x256xf32>
    %23 = arith.addf %18, %22 : vector<56x256xf32>
    %24 = vector.extract_strided_slice %23 {offsets = [0, 0], sizes = [56, 128], strides = [1, 1]} : vector<56x256xf32> to vector<56x128xf32>
    %25 = vector.extract_strided_slice %23 {offsets = [0, 128], sizes = [56, 128], strides = [1, 1]} : vector<56x256xf32> to vector<56x128xf32>
    %26 = arith.maximumf %24, %25 : vector<56x128xf32>
    %c0_24 = arith.constant 0 : index
    %c0_25 = arith.constant 0 : index
    %27 = vector.load %arg3[%c0_24, %c0_25] : memref<1x128xf32, #tpu.memory_space<vmem>>, vector<1x128xf32>
    %28 = vector.broadcast %27 : vector<1x128xf32> to vector<56x128xf32>
    %29 = arith.addf %26, %28 : vector<56x128xf32>
    %cst_26 = arith.constant 0.000000e+00 : f32
    %30 = vector.broadcast %cst_26 : f32 to vector<56x128xf32>
    %31 = arith.maximumf %29, %30 : vector<56x128xf32>
    %c0_27 = arith.constant 0 : index
    %c0_28 = arith.constant 0 : index
    %32 = vector.load %arg13[%c0_27, %c0_28] : memref<64x128xf32, #tpu.memory_space<vmem>>, vector<56x128xf32>
    tpu.vector_store %arg13[%c0_27, %c0_28], %31 {strides = array<i32>} : memref<64x128xf32, #tpu.memory_space<vmem>>, vector<56x128xf32>,
    %c0_29 = arith.constant 0 : index
    %c0_30 = arith.constant 0 : index
    %33 = tpu.strided_load %arg13[%c0_29, %c0_30] {strides = array<i32: 2, 1>} : memref<64x128xf32, #tpu.memory_space<vmem>>, vector<28x128xf32>
    %c1_31 = arith.constant 1 : index
    %c0_32 = arith.constant 0 : index
    %34 = tpu.strided_load %arg13[%c1_31, %c0_32] {strides = array<i32: 2, 1>} : memref<64x128xf32, #tpu.memory_space<vmem>>, vector<28x128xf32>
    %35 = arith.maximumf %33, %34 : vector<28x128xf32>
    %c0_33 = arith.constant 0 : index
    %c0_34 = arith.constant 0 : index
    %36 = vector.load %arg14[%c0_33, %c0_34] : memref<32x128xf32, #tpu.memory_space<vmem>>, vector<28x128xf32>
    tpu.vector_store %arg14[%c0_33, %c0_34], %35 {strides = array<i32>} : memref<32x128xf32, #tpu.memory_space<vmem>>, vector<28x128xf32>,
    %c0_35 = arith.constant 0 : index
    %c0_36 = arith.constant 0 : index
    %37 = vector.load %arg14[%c0_35, %c0_36] : memref<32x128xf32, #tpu.memory_space<vmem>>, vector<24x128xf32>
    %38 = arith.truncf %37 : vector<24x128xf32> to vector<24x128xbf16>
    %c0_37 = arith.constant 0 : index
    %c0_38 = arith.constant 0 : index
    %c0_39 = arith.constant 0 : index
    %39 = vector.load %arg4[%c0_37, %c0_38, %c0_39] : memref<5x128x256xbf16, #tpu.memory_space<vmem>>, vector<1x128x256xbf16>
    %40 = vector.shape_cast %39 : vector<1x128x256xbf16> to vector<128x256xbf16>
    %cst_40 = arith.constant dense<0.000000e+00> : vector<24x256xf32>
    %41 = tpu.matmul %38, %40, %cst_40 {dimension_numbers = #tpu.dot_dimension_numbers<[1], [0], [0], [1], [0, 0, 1, 1], [], []>} : vector<24x128xbf16>, vector<128x256xbf16>, vector<24x256xf32> -> vector<24x256xf32>
    %c1_41 = arith.constant 1 : index
    %c0_42 = arith.constant 0 : index
    %42 = vector.load %arg14[%c1_41, %c0_42] : memref<32x128xf32, #tpu.memory_space<vmem>>, vector<24x128xf32>
    %43 = arith.truncf %42 : vector<24x128xf32> to vector<24x128xbf16>
    %c1_43 = arith.constant 1 : index
    %c0_44 = arith.constant 0 : index
    %c0_45 = arith.constant 0 : index
    %44 = vector.load %arg4[%c1_43, %c0_44, %c0_45] : memref<5x128x256xbf16, #tpu.memory_space<vmem>>, vector<1x128x256xbf16>
    %45 = vector.shape_cast %44 : vector<1x128x256xbf16> to vector<128x256xbf16>
    %cst_46 = arith.constant dense<0.000000e+00> : vector<24x256xf32>
    %46 = tpu.matmul %43, %45, %cst_46 {dimension_numbers = #tpu.dot_dimension_numbers<[1], [0], [0], [1], [0, 0, 1, 1], [], []>} : vector<24x128xbf16>, vector<128x256xbf16>, vector<24x256xf32> -> vector<24x256xf32>
    %47 = arith.addf %41, %46 : vector<24x256xf32>
    %c2_47 = arith.constant 2 : index
    %c0_48 = arith.constant 0 : index
    %48 = vector.load %arg14[%c2_47, %c0_48] : memref<32x128xf32, #tpu.memory_space<vmem>>, vector<24x128xf32>
    %49 = arith.truncf %48 : vector<24x128xf32> to vector<24x128xbf16>
    %c2_49 = arith.constant 2 : index
    %c0_50 = arith.constant 0 : index
    %c0_51 = arith.constant 0 : index
    %50 = vector.load %arg4[%c2_49, %c0_50, %c0_51] : memref<5x128x256xbf16, #tpu.memory_space<vmem>>, vector<1x128x256xbf16>
    %51 = vector.shape_cast %50 : vector<1x128x256xbf16> to vector<128x256xbf16>
    %cst_52 = arith.constant dense<0.000000e+00> : vector<24x256xf32>
    %52 = tpu.matmul %49, %51, %cst_52 {dimension_numbers = #tpu.dot_dimension_numbers<[1], [0], [0], [1], [0, 0, 1, 1], [], []>} : vector<24x128xbf16>, vector<128x256xbf16>, vector<24x256xf32> -> vector<24x256xf32>
    %53 = arith.addf %47, %52 : vector<24x256xf32>
    %c3_53 = arith.constant 3 : index
    %c0_54 = arith.constant 0 : index
    %54 = vector.load %arg14[%c3_53, %c0_54] : memref<32x128xf32, #tpu.memory_space<vmem>>, vector<24x128xf32>
    %55 = arith.truncf %54 : vector<24x128xf32> to vector<24x128xbf16>
    %c3_55 = arith.constant 3 : index
    %c0_56 = arith.constant 0 : index
    %c0_57 = arith.constant 0 : index
    %56 = vector.load %arg4[%c3_55, %c0_56, %c0_57] : memref<5x128x256xbf16, #tpu.memory_space<vmem>>, vector<1x128x256xbf16>
    %57 = vector.shape_cast %56 : vector<1x128x256xbf16> to vector<128x256xbf16>
    %cst_58 = arith.constant dense<0.000000e+00> : vector<24x256xf32>
    %58 = tpu.matmul %55, %57, %cst_58 {dimension_numbers = #tpu.dot_dimension_numbers<[1], [0], [0], [1], [0, 0, 1, 1], [], []>} : vector<24x128xbf16>, vector<128x256xbf16>, vector<24x256xf32> -> vector<24x256xf32>
    %59 = arith.addf %53, %58 : vector<24x256xf32>
    %c4_59 = arith.constant 4 : index
    %c0_60 = arith.constant 0 : index
    %60 = vector.load %arg14[%c4_59, %c0_60] : memref<32x128xf32, #tpu.memory_space<vmem>>, vector<24x128xf32>
    %61 = arith.truncf %60 : vector<24x128xf32> to vector<24x128xbf16>
    %c4_61 = arith.constant 4 : index
    %c0_62 = arith.constant 0 : index
    %c0_63 = arith.constant 0 : index
    %62 = vector.load %arg4[%c4_61, %c0_62, %c0_63] : memref<5x128x256xbf16, #tpu.memory_space<vmem>>, vector<1x128x256xbf16>
    %63 = vector.shape_cast %62 : vector<1x128x256xbf16> to vector<128x256xbf16>
    %cst_64 = arith.constant dense<0.000000e+00> : vector<24x256xf32>
    %64 = tpu.matmul %61, %63, %cst_64 {dimension_numbers = #tpu.dot_dimension_numbers<[1], [0], [0], [1], [0, 0, 1, 1], [], []>} : vector<24x128xbf16>, vector<128x256xbf16>, vector<24x256xf32> -> vector<24x256xf32>
    %65 = arith.addf %59, %64 : vector<24x256xf32>
    %66 = vector.extract_strided_slice %65 {offsets = [0, 0], sizes = [24, 128], strides = [1, 1]} : vector<24x256xf32> to vector<24x128xf32>
    %67 = vector.extract_strided_slice %65 {offsets = [0, 128], sizes = [24, 128], strides = [1, 1]} : vector<24x256xf32> to vector<24x128xf32>
    %68 = arith.maximumf %66, %67 : vector<24x128xf32>
    %c0_65 = arith.constant 0 : index
    %c0_66 = arith.constant 0 : index
    %69 = vector.load %arg5[%c0_65, %c0_66] : memref<1x128xf32, #tpu.memory_space<vmem>>, vector<1x128xf32>
    %70 = vector.broadcast %69 : vector<1x128xf32> to vector<24x128xf32>
    %71 = arith.addf %68, %70 : vector<24x128xf32>
    %cst_67 = arith.constant 0.000000e+00 : f32
    %72 = vector.broadcast %cst_67 : f32 to vector<24x128xf32>
    %73 = arith.maximumf %71, %72 : vector<24x128xf32>
    %c0_68 = arith.constant 0 : index
    %c0_69 = arith.constant 0 : index
    %74 = vector.load %arg15[%c0_68, %c0_69] : memref<32x128xf32, #tpu.memory_space<vmem>>, vector<24x128xf32>
    tpu.vector_store %arg15[%c0_68, %c0_69], %73 {strides = array<i32>} : memref<32x128xf32, #tpu.memory_space<vmem>>, vector<24x128xf32>,
    %c0_70 = arith.constant 0 : index
    %c0_71 = arith.constant 0 : index
    %75 = tpu.strided_load %arg15[%c0_70, %c0_71] {strides = array<i32: 2, 1>} : memref<32x128xf32, #tpu.memory_space<vmem>>, vector<12x128xf32>
    %c1_72 = arith.constant 1 : index
    %c0_73 = arith.constant 0 : index
    %76 = tpu.strided_load %arg15[%c1_72, %c0_73] {strides = array<i32: 2, 1>} : memref<32x128xf32, #tpu.memory_space<vmem>>, vector<12x128xf32>
    %77 = arith.maximumf %75, %76 : vector<12x128xf32>
    %c0_74 = arith.constant 0 : index
    %c0_75 = arith.constant 0 : index
    %78 = vector.load %arg16[%c0_74, %c0_75] : memref<16x128xf32, #tpu.memory_space<vmem>>, vector<12x128xf32>
    tpu.vector_store %arg16[%c0_74, %c0_75], %77 {strides = array<i32>} : memref<16x128xf32, #tpu.memory_space<vmem>>, vector<12x128xf32>,
    %c0_76 = arith.constant 0 : index
    %c0_77 = arith.constant 0 : index
    %79 = tpu.strided_load %arg16[%c0_76, %c0_77] {strides = array<i32: 8, 1>} : memref<16x128xf32, #tpu.memory_space<vmem>>, vector<2x128xf32>
    %80 = arith.truncf %79 : vector<2x128xf32> to vector<2x128xbf16>
    %c0_78 = arith.constant 0 : index
    %c0_79 = arith.constant 0 : index
    %c0_80 = arith.constant 0 : index
    %81 = vector.load %arg6[%c0_78, %c0_79, %c0_80] : memref<4x128x128xbf16, #tpu.memory_space<vmem>>, vector<1x128x128xbf16>
    %82 = vector.shape_cast %81 : vector<1x128x128xbf16> to vector<128x128xbf16>
    %cst_81 = arith.constant dense<0.000000e+00> : vector<2x128xf32>
    %83 = tpu.matmul %80, %82, %cst_81 {dimension_numbers = #tpu.dot_dimension_numbers<[1], [0], [0], [1], [0, 0, 1, 1], [], []>} : vector<2x128xbf16>, vector<128x128xbf16>, vector<2x128xf32> -> vector<2x128xf32>
    %c1_82 = arith.constant 1 : index
    %c0_83 = arith.constant 0 : index
    %84 = tpu.strided_load %arg16[%c1_82, %c0_83] {strides = array<i32: 8, 1>} : memref<16x128xf32, #tpu.memory_space<vmem>>, vector<2x128xf32>
    %85 = arith.truncf %84 : vector<2x128xf32> to vector<2x128xbf16>
    %c1_84 = arith.constant 1 : index
    %c0_85 = arith.constant 0 : index
    %c0_86 = arith.constant 0 : index
    %86 = vector.load %arg6[%c1_84, %c0_85, %c0_86] : memref<4x128x128xbf16, #tpu.memory_space<vmem>>, vector<1x128x128xbf16>
    %87 = vector.shape_cast %86 : vector<1x128x128xbf16> to vector<128x128xbf16>
    %cst_87 = arith.constant dense<0.000000e+00> : vector<2x128xf32>
    %88 = tpu.matmul %85, %87, %cst_87 {dimension_numbers = #tpu.dot_dimension_numbers<[1], [0], [0], [1], [0, 0, 1, 1], [], []>} : vector<2x128xbf16>, vector<128x128xbf16>, vector<2x128xf32> -> vector<2x128xf32>
    %89 = arith.addf %83, %88 : vector<2x128xf32>
    %c2_88 = arith.constant 2 : index
    %c0_89 = arith.constant 0 : index
    %90 = tpu.strided_load %arg16[%c2_88, %c0_89] {strides = array<i32: 8, 1>} : memref<16x128xf32, #tpu.memory_space<vmem>>, vector<2x128xf32>
    %91 = arith.truncf %90 : vector<2x128xf32> to vector<2x128xbf16>
    %c2_90 = arith.constant 2 : index
    %c0_91 = arith.constant 0 : index
    %c0_92 = arith.constant 0 : index
    %92 = vector.load %arg6[%c2_90, %c0_91, %c0_92] : memref<4x128x128xbf16, #tpu.memory_space<vmem>>, vector<1x128x128xbf16>
    %93 = vector.shape_cast %92 : vector<1x128x128xbf16> to vector<128x128xbf16>
    %cst_93 = arith.constant dense<0.000000e+00> : vector<2x128xf32>
    %94 = tpu.matmul %91, %93, %cst_93 {dimension_numbers = #tpu.dot_dimension_numbers<[1], [0], [0], [1], [0, 0, 1, 1], [], []>} : vector<2x128xbf16>, vector<128x128xbf16>, vector<2x128xf32> -> vector<2x128xf32>
    %95 = arith.addf %89, %94 : vector<2x128xf32>
    %c3_94 = arith.constant 3 : index
    %c0_95 = arith.constant 0 : index
    %96 = tpu.strided_load %arg16[%c3_94, %c0_95] {strides = array<i32: 8, 1>} : memref<16x128xf32, #tpu.memory_space<vmem>>, vector<2x128xf32>
    %97 = arith.truncf %96 : vector<2x128xf32> to vector<2x128xbf16>
    %c3_96 = arith.constant 3 : index
    %c0_97 = arith.constant 0 : index
    %c0_98 = arith.constant 0 : index
    %98 = vector.load %arg6[%c3_96, %c0_97, %c0_98] : memref<4x128x128xbf16, #tpu.memory_space<vmem>>, vector<1x128x128xbf16>
    %99 = vector.shape_cast %98 : vector<1x128x128xbf16> to vector<128x128xbf16>
    %cst_99 = arith.constant dense<0.000000e+00> : vector<2x128xf32>
    %100 = tpu.matmul %97, %99, %cst_99 {dimension_numbers = #tpu.dot_dimension_numbers<[1], [0], [0], [1], [0, 0, 1, 1], [], []>} : vector<2x128xbf16>, vector<128x128xbf16>, vector<2x128xf32> -> vector<2x128xf32>
    %101 = arith.addf %95, %100 : vector<2x128xf32>
    %c0_100 = arith.constant 0 : index
    %c0_101 = arith.constant 0 : index
    %102 = vector.load %arg7[%c0_100, %c0_101] : memref<1x128xf32, #tpu.memory_space<vmem>>, vector<1x128xf32>
    %103 = vector.broadcast %102 : vector<1x128xf32> to vector<2x128xf32>
    %104 = arith.addf %101, %103 : vector<2x128xf32>
    %cst_102 = arith.constant 0.000000e+00 : f32
    %105 = vector.broadcast %cst_102 : f32 to vector<2x128xf32>
    %106 = arith.maximumf %104, %105 : vector<2x128xf32>
    %107 = arith.truncf %106 : vector<2x128xf32> to vector<2x128xbf16>
    %c0_103 = arith.constant 0 : index
    %c0_104 = arith.constant 0 : index
    %108 = vector.load %arg8[%c0_103, %c0_104] : memref<128x128xbf16, #tpu.memory_space<vmem>>, vector<128x128xbf16>
    %cst_105 = arith.constant dense<0.000000e+00> : vector<2x128xf32>
    %109 = tpu.matmul %107, %108, %cst_105 {dimension_numbers = #tpu.dot_dimension_numbers<[1], [0], [0], [1], [0, 0, 1, 1], [], []>} : vector<2x128xbf16>, vector<128x128xbf16>, vector<2x128xf32> -> vector<2x128xf32>
    %c0_106 = arith.constant 0 : index
    %c0_107 = arith.constant 0 : index
    %110 = vector.load %arg9[%c0_106, %c0_107] : memref<1x128xf32, #tpu.memory_space<vmem>>, vector<1x128xf32>
    %111 = vector.broadcast %110 : vector<1x128xf32> to vector<2x128xf32>
    %112 = arith.addf %109, %111 : vector<2x128xf32>
    %cst_108 = arith.constant 0.000000e+00 : f32
    %113 = vector.broadcast %cst_108 : f32 to vector<2x128xf32>
    %114 = arith.maximumf %112, %113 : vector<2x128xf32>
    %115 = arith.truncf %114 : vector<2x128xf32> to vector<2x128xbf16>
    %c0_109 = arith.constant 0 : index
    %c0_110 = arith.constant 0 : index
    %116 = vector.load %arg10[%c0_109, %c0_110] : memref<128x128xbf16, #tpu.memory_space<vmem>>, vector<128x128xbf16>
    %cst_111 = arith.constant dense<0.000000e+00> : vector<2x128xf32>
    %117 = tpu.matmul %115, %116, %cst_111 {dimension_numbers = #tpu.dot_dimension_numbers<[1], [0], [0], [1], [0, 0, 1, 1], [], []>} : vector<2x128xbf16>, vector<128x128xbf16>, vector<2x128xf32> -> vector<2x128xf32>
    %c0_112 = arith.constant 0 : index
    %c0_113 = arith.constant 0 : index
    %118 = vector.load %arg11[%c0_112, %c0_113] : memref<1x128xf32, #tpu.memory_space<vmem>>, vector<1x128xf32>
    %119 = vector.broadcast %118 : vector<1x128xf32> to vector<2x128xf32>
    %120 = arith.addf %117, %119 : vector<2x128xf32>
    %121 = tpu.iota {dimensions = array<i32: 1>} : vector<2x128xi32>
    %c10_i32 = arith.constant 10 : i32
    %122 = vector.broadcast %c10_i32 : i32 to vector<2x128xi32>
    %123 = arith.cmpi slt, %121, %122 : vector<2x128xi32>
    %cst_114 = arith.constant 0xFF800000 : f32
    %124 = vector.broadcast %cst_114 : f32 to vector<2x128xf32>
    %125 = arith.select %123, %120, %124 : vector<2x128xi1>, vector<2x128xf32>
    %cst_115 = arith.constant dense<0xFF800000> : vector<2xf32>
    %126 = vector.multi_reduction <maximumf>, %125, %cst_115 [1] : vector<2x128xf32> to vector<2xf32>
    %127 = vector.shape_cast %126 : vector<2xf32> to vector<2x1xf32>
    %128 = vector.broadcast %127 : vector<2x1xf32> to vector<2x128xf32>
    %129 = arith.subf %125, %128 : vector<2x128xf32>
    %130 = math.exp %129 : vector<2x128xf32>
    %cst_116 = arith.constant dense<0.000000e+00> : vector<2xf32>
    %131 = vector.multi_reduction <add>, %130, %cst_116 [1] : vector<2x128xf32> to vector<2xf32>
    %132 = vector.shape_cast %131 : vector<2xf32> to vector<2x1xf32>
    %133 = math.log %132 : vector<2x1xf32>
    %134 = vector.broadcast %127 : vector<2x1xf32> to vector<2x128xf32>
    %135 = arith.subf %120, %134 : vector<2x128xf32>
    %136 = vector.broadcast %133 : vector<2x1xf32> to vector<2x128xf32>
    %137 = arith.subf %135, %136 : vector<2x128xf32>
    %c0_117 = arith.constant 0 : index
    %c0_118 = arith.constant 0 : index
    %138 = vector.load %arg12[%c0_117, %c0_118] : memref<2x128xf32, #tpu.memory_space<vmem>>, vector<2x128xf32>
    tpu.vector_store %arg12[%c0_117, %c0_118], %137 {strides = array<i32>} : memref<2x128xf32, #tpu.memory_space<vmem>>, vector<2x128xf32>,
    return
  }
  func.func @transform_0(%arg0: i32) -> (i32, i32) {
    %c0_i32 = arith.constant 0 : i32
    %c0_i32_0 = arith.constant 0 : i32
    return %arg0, %c0_i32 : i32, i32
  }
  func.func @transform_1(%arg0: i32) -> (i32, i32, i32) {
    %c0_i32 = arith.constant 0 : i32
    %c0_i32_0 = arith.constant 0 : i32
    %c0_i32_1 = arith.constant 0 : i32
    %c0_i32_2 = arith.constant 0 : i32
    return %c0_i32, %c0_i32_0, %c0_i32_1 : i32, i32, i32
  }
  func.func @transform_2(%arg0: i32) -> (i32, i32) {
    %c0_i32 = arith.constant 0 : i32
    %c0_i32_0 = arith.constant 0 : i32
    %c0_i32_1 = arith.constant 0 : i32
    return %c0_i32, %c0_i32_0 : i32, i32
  }
  func.func @transform_3(%arg0: i32) -> (i32, i32, i32) {
    %c0_i32 = arith.constant 0 : i32
    %c0_i32_0 = arith.constant 0 : i32
    %c0_i32_1 = arith.constant 0 : i32
    %c0_i32_2 = arith.constant 0 : i32
    return %c0_i32, %c0_i32_0, %c0_i32_1 : i32, i32, i32
  }
  func.func @transform_4(%arg0: i32) -> (i32, i32) {
    %c0_i32 = arith.constant 0 : i32
    %c0_i32_0 = arith.constant 0 : i32
    %c0_i32_1 = arith.constant 0 : i32
    return %c0_i32, %c0_i32_0 : i32, i32
  }
  func.func @transform_5(%arg0: i32) -> (i32, i32, i32) {
    %c0_i32 = arith.constant 0 : i32
    %c0_i32_0 = arith.constant 0 : i32
    %c0_i32_1 = arith.constant 0 : i32
    %c0_i32_2 = arith.constant 0 : i32
    return %c0_i32, %c0_i32_0, %c0_i32_1 : i32, i32, i32
  }
  func.func @transform_6(%arg0: i32) -> (i32, i32) {
    %c0_i32 = arith.constant 0 : i32
    %c0_i32_0 = arith.constant 0 : i32
    %c0_i32_1 = arith.constant 0 : i32
    return %c0_i32, %c0_i32_0 : i32, i32
  }
  func.func @transform_7(%arg0: i32) -> (i32, i32) {
    %c0_i32 = arith.constant 0 : i32
    %c0_i32_0 = arith.constant 0 : i32
    %c0_i32_1 = arith.constant 0 : i32
    return %c0_i32, %c0_i32_0 : i32, i32
  }
  func.func @transform_8(%arg0: i32) -> (i32, i32) {
    %c0_i32 = arith.constant 0 : i32
    %c0_i32_0 = arith.constant 0 : i32
    %c0_i32_1 = arith.constant 0 : i32
    return %c0_i32, %c0_i32_0 : i32, i32
  }
  func.func @transform_9(%arg0: i32) -> (i32, i32) {
    %c0_i32 = arith.constant 0 : i32
    %c0_i32_0 = arith.constant 0 : i32
    %c0_i32_1 = arith.constant 0 : i32
    return %c0_i32, %c0_i32_0 : i32, i32
  }
  func.func @transform_10(%arg0: i32) -> (i32, i32) {
    %c0_i32 = arith.constant 0 : i32
    %c0_i32_0 = arith.constant 0 : i32
    %c0_i32_1 = arith.constant 0 : i32
    return %c0_i32, %c0_i32_0 : i32, i32
  }
  func.func @transform_11(%arg0: i32) -> (i32, i32) {
    %c0_i32 = arith.constant 0 : i32
    %c0_i32_0 = arith.constant 0 : i32
    return %arg0, %c0_i32 : i32, i32
  }
}

</mosaic_0001>

<bundles_post_ra>
// kernel: lenet_forward.1
= control target key start
LH: loop header
LB: loop body
LE: loop exit
PB: predicated region body
PF: predicated region fallthrough
CT: control target
= control target key end

     0   :  { %16 = vsyncpa [#allocation7], 0  ;;  %s3573_s0 = inlined_call_operand.vmem [shape: bf16[64,28], index: 0, kind: input, shape index: {}]   ;;  %s3574_s1 = inlined_call_operand.hbm [shape: bf16[5,28,256], index: 1, kind: input, shape index: {}]   ;;  %s3575_s2 = inlined_call_operand.vmem [shape: f32[1,128], index: 2, kind: input, shape index: {}]   ;;  %s3576_s3 = inlined_call_operand.hbm [shape: bf16[5,128,256], index: 3, kind: input, shape index: {}]   ;;  %s3577_s4 = inlined_call_operand.vmem [shape: f32[1,128], index: 4, kind: input, shape index: {}]   ;;  %s3578_s5 = inlined_call_operand.vmem [shape: bf16[4,128,128], index: 5, kind: input, shape index: {}]   ;;  %s3579_s6 = inlined_call_operand.vmem [shape: f32[1,128], index: 6, kind: input, shape index: {}]   ;;  %s3580_s7 = inlined_call_operand.vmem [shape: bf16[128,128], index: 7, kind: input, shape index: {}]   ;;  %s3581_s8 = inlined_call_operand.vmem [shape: f32[1,128], index: 8, kind: input, shape index: {}]   ;;  %s3582_s9 = inlined_call_operand.hbm [shape: bf16[128,128], index: 9, kind: input, shape index: {}]   ;;  %s3583_s10 = inlined_call_operand.vmem [shape: f32[1,128], index: 10, kind: input, shape index: {}]   ;;  %s3584_s11 = inlined_call_operand.hbm [shape: f32[2,128], index: 11, kind: output, shape index: {}]  }
   0x1   :  { %17 = vsyncpa [#allocation10], 0 }
   0x2   :  { %18 = vsyncpa [#allocation8], 0  ;;  %s40_s19 = sshll.u32 %s3576_s3, 4  ;;  %s3009_s20 = smov [#allocation9]   ;;  %s41_s19 = int_to_ptr.hbm [resolvable:$true] %s40_s19 }
   0x3   :  { %s42_s21 = sshll.u32 %s3009_s20, 4  ;;  %s25_s24 = sshll.u32 %s3574_s1, 4  ;;  %s43_s21 = int_to_ptr.vmem [resolvable:$true] %s42_s21  ;;  %s26_s24 = int_to_ptr.hbm [resolvable:$true] %s25_s24 }
   0x4   :  { %s3010_s25 = smov 128   ;;  %s3011_s26 = smov 8  }
   0x5   :  { %48 = dma.hbm_to_vmem [thread:$0]  %s41_s19, 10240, %s43_s21, [#allocation10], %s3010_s25, %s3010_s25, %s3011_s26  }
   0x6   :  { %s3012_s27 = smov [#allocation6]   ;;  %s63_s12 = sshll.u32 %s3582_s9, 4  ;;  %s64_s12 = int_to_ptr.hbm [resolvable:$true] %s63_s12 }
   0x7   :  { %s27_s28 = sshll.u32 %s3012_s27, 4  ;;  %s3013_s3 = smov [#allocation11]   ;;  %s28_s28 = int_to_ptr.vmem [resolvable:$true] %s27_s28 }
   0x8   :  { %33 = dma.hbm_to_vmem [thread:$0]  %s26_s24, 2560, %s28_s28, [#allocation7], %s3010_s25, %s3010_s25, %s3011_s26  }
   0x9   :  { %s65_s13 = sshll.u32 %s3013_s3, 4  ;;  %s3014_s14 = smov 64   ;;  %s66_s13 = int_to_ptr.vmem [resolvable:$true] %s65_s13 }
   0xa   :  { %s3015_s15 = smov 4  }
   0xb   :  { %71 = dma.hbm_to_vmem [thread:$0]  %s64_s12, 1024, %s66_s13, [#allocation10], %s3014_s14, %s3014_s14, %s3015_s15  }
   0xc   :  { %3003 = dma.done.wait [#allocation7], 2560  }
   0xd   :  { %3004 = vsyncadd [#allocation7], 4294964736 }
   0xe   :  { %3005 = dma.done.wait [#allocation10], 11264  }
   0xf   :  { %3006 = vsyncadd [#allocation10], 4294956032  ;;  %vm187_vm0 = vcmask 1045504   ;;  %v2066_v0 = vld [vmem:[#allocation6 + $0x30] sm:$0xf]  ;;  %v3098_v26 = vld [vmem:[%s3573_s0 + $0x8] sm:$0xff] }
  0x10   :  { %v2745_v1 = vld [vmem:[#allocation6 + $0x34] sm:$0x30]  ;;  %v2744_v2 = vld [vmem:[#allocation6 + $0x34] sm:$0xf]  ;;  %v2068_v4 = vld [vmem:[#allocation6 + $0x38] sm:$0x30] }
  0x11   :  { %v2067_v3 = vor.u32 %v2745_v1, %v2066_v0  ;;  %v2090_v5 = vld [vmem:[#allocation6 + $0x10] sm:$0xf]  ;;  %v2741_v6 = vld [vmem:[#allocation6 + $0x14] sm:$0x30]  ;;  %v2071_v7 = vor.u32 %v2744_v2, %v2068_v4  ;;  %v2740_v9 = vld [vmem:[#allocation6 + $0x14] sm:$0xf] }
  0x12   :  { %v2091_v8 = vor.u32 %v2741_v6, %v2090_v5  ;;  %v2092_v10 = vld [vmem:[#allocation6 + $0x18] sm:$0x30]  ;;  %v2058_v11 = vld [vmem:[#allocation6 + $0x20] sm:$0xf]  ;;  %v2743_v14 = vld [vmem:[#allocation6 + $0x24] sm:$0xf0] }
  0x13   :  { %v189_v12 = vsel %vm187_vm0, %v2067_v3, 0  ;;  %v2095_v13 = vor.u32 %v2740_v9, %v2092_v10  ;;  %v2742_v15 = vld [vmem:[#allocation6 + $0x24] sm:$0xf]  ;;  %v3090_v16 = vld [vmem:[%s3573_s0] sm:$0xff]   ;;  %v192_v17 = vsel %vm187_vm0, %v2071_v7, 0  ;;  %v2059_v19 = vor.u32 %v2743_v14, %v2058_v11  ;;  %s2037_s21 = sshll.u32 %s3584_s11, 4  ;;  %s2038_s21 = int_to_ptr.hbm [resolvable:$true] %s2037_s21 }
  0x14   :  { %200 = vmatpush.bf16.msra.mxu0 %v189_v12  ;;  %v279_v18 = vsel %vm187_vm0, %v2091_v8, 0  ;;  %v2060_v20 = vld [vmem:[#allocation6 + $0x28] sm:$0xf0]  ;;  %v2082_v21 = vld [vmem:[#allocation6] sm:$0xf]  ;;  %228 = vmatpush.bf16.msra.mxu1 %v192_v17  ;;  %v126_v29 = vshrl.u32 %v3090_v16, 16 }
  0x15   :  { %290 = vmatpush.bf16.msra.mxu2 %v279_v18  ;;  %v282_v22 = vsel %vm187_vm0, %v2095_v13, 0  ;;  %v2063_v23 = vor.u32 %v2742_v15, %v2060_v20  ;;  %v2739_v24 = vld [vmem:[#allocation6 + $0x4] sm:$0xf0]  ;;  %v2738_v25 = vld [vmem:[#allocation6 + $0x4] sm:$0xf]  ;;  %v128_v30 = vshll.u32 %v3090_v16, 16 }
  0x16   :  { %318 = vmatpush.bf16.msra.mxu3 %v282_v22  ;;  %v2083_v27 = vor.u32 %v2739_v24, %v2082_v21  ;;  %v2084_v28 = vld [vmem:[#allocation6 + $0x8] sm:$0xf0]  ;;  %v2114_v31 = vld [vmem:[#allocation6 + $0x50] sm:$0xf]  ;;  %v133_v33 = vshll.u32 %v3098_v26, 16  ;;  %vm174_vm2 = vcmask 228352  }
  0x17   :  { %v2087_v32 = vor.u32 %v2738_v25, %v2084_v28  ;;  %v2749_v34 = vld [vmem:[#allocation6 + $0x54] sm:$0x30]  ;;  %v2748_v35 = vld [vmem:[#allocation6 + $0x54] sm:$0xf]  ;;  %v130_v36 = vrot.slane %v128_v30, 1  ;;  %v3117_v45 = vld [vmem:[%s3573_s0 + $0x10] sm:$0xff] }
  0x18   :  { %201 = vmatpush.bf16.msra.mxu0 %v2059_v19  ;;  %v2115_v37 = vor.u32 %v2749_v34, %v2114_v31  ;;  %v2116_v38 = vld [vmem:[#allocation6 + $0x58] sm:$0x30]  ;;  %229 = vmatpush.bf16.msra.mxu1 %v2063_v23  ;;  %vm124_vm1 = vsmask.f32 7424  ;;  %v135_v39 = vrot.slane %v133_v33, 1  ;;  %v137_v52 = vshrl.u32 %v3098_v26, 16 }
  0x19   :  { %291 = vmatpush.bf16.msra.mxu2 %v2083_v27  ;;  %v2119_v40 = vor.u32 %v2748_v35, %v2116_v38  ;;  %v131_v41 = vor.u32 %v130_v36, %v126_v29  ;;  %v2106_v46 = vld [vmem:[#allocation6 + $0x40] sm:$0xf]  ;;  %v2747_v47 = vld [vmem:[#allocation6 + $0x44] sm:$0xf0]  ;;  %v2746_v49 = vld [vmem:[#allocation6 + $0x44] sm:$0xf]  ;;  %v2889_v29 = vunpack.c.h.b16 %v3090_v16 }
  0x1a   :  { %319 = vmatpush.bf16.msra.mxu3 %v2087_v32  ;;  %v388_v42 = vsel %vm187_vm0, %v2115_v37, 0  ;;  %v2107_v48 = vor.u32 %v2747_v47, %v2106_v46  ;;  %v2108_v50 = vld [vmem:[#allocation6 + $0x48] sm:$0xf0]  ;;  %v141_v53 = vshll.u32 %v3117_v45, 16  ;;  %v139_v54 = vor.u32 %v137_v52, %v135_v39  ;;  %v93_v56 = vld [vmem:[%s3573_s0 + $0x18] sm:$0xf] }
  0x1b   :  { %v391_v43 = vsel %vm187_vm0, %v2119_v40, 0  ;;  %v136_v44 = vsel %vm124_vm1, %v131_v41, %v135_v39  ;;  %v2111_v51 = vor.u32 %v2746_v49, %v2108_v50  ;;  %v98_v57 = vld [vmem:[%s3573_s0 + $0x1c] sm:$0x1]  ;;  %v3132_v59 = vunpack.c.l.b16 %v93_v56  ;;  %v2138_v62 = vld [vmem:[#allocation6 + $0x70] sm:$0xf] }
  0x1c   :  { %399 = vmatpush.bf16.msrb.mxu0 %v388_v42  ;;  %2096 = vmatmul.msk.bf16.vlgmr.msra.gmra.mxu2 %vm174_vm2, %v3090_v16  ;;  %v143_v55 = vrot.slane %v141_v53, 1  ;;  %v119_v60 = vunpack.c.l.b16 %v98_v57  ;;  %v2753_v63 = vld [vmem:[#allocation6 + $0x74] sm:$0x30]  ;;  %v2752_v0 = vld [vmem:[#allocation6 + $0x74] sm:$0xf]  ;;  %v145_v9 = vshrl.u32 %v3117_v45, 16 }
  0x1d   :  { %427 = vmatpush.bf16.msrb.mxu1 %v391_v43  ;;  %2072 = vmatmul.msk.bf16.vlgmr.msra.gmra.mxu0 %vm174_vm2, %v136_v44  ;;  %v2139_v1 = vor.u32 %v2753_v63, %v2138_v62  ;;  %v2140_v2 = vld [vmem:[#allocation6 + $0x78] sm:$0x30]  ;;  %v2130_v3 = vld [vmem:[#allocation6 + $0x60] sm:$0xf]  ;;  %v2751_v4 = vld [vmem:[#allocation6 + $0x64] sm:$0xf0]  ;;  %v250_v31 = vpack.c.b16 %v3132_v59, %v3132_v59 }
  0x1e   :  { %2076 = vmatmul.msk.bf16.vlgmr.msra.gmra.mxu1 %vm174_vm2, %v136_v44  ;;  %2100 = vmatmul.msk.bf16.vlgmr.msra.gmra.mxu3 %vm174_vm2, %v3090_v16  ;;  %v144_v58 = vsel %vm124_vm1, %v139_v54, %v143_v55  ;;  %v3141_v61 = vpack.c.b16 %v119_v60, %v3132_v59  ;;  %v2143_v5 = vor.u32 %v2752_v0, %v2140_v2  ;;  %v2750_v6 = vld [vmem:[#allocation6 + $0x64] sm:$0xf]  ;;  %v2132_v7 = vld [vmem:[#allocation6 + $0x68] sm:$0xf0]  ;;  %v2162_v18 = vld [vmem:[#allocation6 + $0x90] sm:$0xf] }
  0x1f   :  { %v529_v8 = vsel %vm187_vm0, %v2139_v1, 0  ;;  %v2131_v12 = vor.u32 %v2751_v4, %v2130_v3  ;;  %v2135_v13 = vor.u32 %v2750_v6, %v2132_v7  ;;  %v147_v14 = vor.u32 %v145_v9, %v143_v55  ;;  %v2757_v19 = vld [vmem:[#allocation6 + $0x94] sm:$0x30]  ;;  %v2756_v20 = vld [vmem:[#allocation6 + $0x94] sm:$0xf] }
  0x20   :  { %400 = vmatpush.bf16.msrb.mxu0 %v2107_v48  ;;  %v149_v10 = vshll.u32 %v3141_v61, 16  ;;  %540 = vmatpush.bf16.msrb.mxu2 %v529_v8  ;;  %v532_v11 = vsel %vm187_vm0, %v2143_v5, 0  ;;  %v2163_v21 = vor.u32 %v2757_v19, %v2162_v18  ;;  %v2164_v22 = vld [vmem:[#allocation6 + $0x98] sm:$0x30]  ;;  %v340_v25 = vld [vmem:[%s3573_s0] sm:$0xe] }
  0x21   :  { %428 = vmatpush.bf16.msrb.mxu1 %v2111_v51  ;;  %568 = vmatpush.bf16.msrb.mxu3 %v532_v11  ;;  %v2167_v23 = vor.u32 %v2756_v20, %v2164_v22  ;;  %v153_v28 = vshrl.u32 %v3141_v61, 16  ;;  %v347_v30 = vunpack.c.l.b16 %v340_v25  ;;  %v481_v39 = vrot.slane %v137_v52, 1  ;;  %v2755_v48 = vld [vmem:[#allocation6 + $0x84] sm:$0xf0]  ;;  %v2754_v49 = vld [vmem:[#allocation6 + $0x84] sm:$0xf] }
  0x22   :  { %v151_v15 = vrot.slane %v149_v10, 1  ;;  %v652_v24 = vsel %vm187_vm0, %v2163_v21, 0  ;;  %v482_v40 = vrot.slane %v133_v33, 2  ;;  %v351_v44 = vrot.slane %v3098_v26, 1  ;;  %v2154_v33 = vld [vmem:[#allocation6 + $0x80] sm:$0xf] }
  0x23   :  { %v655_v27 = vsel %vm187_vm0, %v2167_v23, 0  ;;  %v348_v34 = vpack.c.b16 %v2889_v29, %v347_v30  ;;  %vm472_vm3 = vsmask.f32 6400  ;;  %vm349_vm4 = vcmask 1046528   ;;  %v2156_v51 = vld [vmem:[#allocation6 + $0x88] sm:$0xf0] }
  0x24   :  { %541 = vmatpush.bf16.msrb.mxu2 %v2131_v12  ;;  %v152_v17 = vsel %vm124_vm1, %v147_v14, %v151_v15  ;;  %663 = vmatpush.bf16.msra.mxu0 %v652_v24  ;;  %v155_v32 = vor.u32 %v153_v28, %v151_v15  ;;  %v483_v42 = vor.u32 %v482_v40, %v481_v39  ;;  %v485_v54 = vrot.slane %v145_v9, 1  ;;  %v463_v56 = vld [vmem:[%s3573_s0 + $0x1c] sm:$0x3]  ;;  %v604_v7 = vld [vmem:[%s3573_s0] sm:$0xc] }
  0x25   :  { %569 = vmatpush.bf16.msrb.mxu3 %v2135_v13  ;;  %691 = vmatpush.bf16.msra.mxu1 %v655_v27  ;;  %v474_v35 = vshrl.u32 %v348_v34, 16  ;;  %v477_v36 = vshll.u32 %v348_v34, 16  ;;  %v350_v43 = vrot.slane %v348_v34, 1  ;;  %v2155_v50 = vor.u32 %v2755_v48, %v2154_v33 }
  0x26   :  { %v2159_v52 = vor.u32 %v2754_v49, %v2156_v51  ;;  %v486_v55 = vrot.slane %v141_v53, 2  ;;  %v353_v60 = vrot.slane %v3117_v45, 1  ;;  %v355_v5 = vrot.slane %v3141_v61, 1 }
  0x27   :  { %v476_v37 = vrot.slane %v474_v35, 1  ;;  %v479_v38 = vrot.slane %v477_v36, 2  ;;  %v352_v47 = vsel %vm349_vm4, %v350_v43, %v351_v44  ;;  %v611_v61 = vunpack.c.l.b16 %v604_v7 }
  0x28   :  { %664 = vmatpush.bf16.msra.mxu0 %v2155_v50  ;;  %v487_v57 = vor.u32 %v486_v55, %v485_v54  ;;  %v354_v0 = vsel %vm349_vm4, %v351_v44, %v353_v60  ;;  %v615_v10 = vrot.slane %v3098_v26, 2  ;;  %vm2015_vm6 = vcmask 1041408  }
  0x29   :  { %v480_v41 = vor.u32 %v479_v38, %v476_v37  ;;  %692 = vmatpush.bf16.msra.mxu1 %v2159_v52  ;;  %v612_v8 = vpack.c.b16 %v2889_v29, %v611_v61 }
  0x2a   :  { %v488_v62 = vsel %vm472_vm3, %v483_v42, %v487_v57 }
  0x2b   :  { %v484_v46 = vsel %vm472_vm3, %v480_v41, %v483_v42  ;;  %v614_v9 = vrot.slane %v612_v8, 2 }
  0x2c   :  { %2097 = vmatmul.msk.bf16.gmra.mxu2 %vm174_vm2, %v3098_v26 }
  0x2d   :  { %2073 = vmatmul.msk.bf16.gmra.mxu0 %vm174_vm2, %v144_v58  ;;  %v616_v13 = vsel %vm187_vm0, %v614_v9, %v615_v10 }
  0x2e   :  { %2077 = vmatmul.msk.bf16.gmra.mxu1 %vm174_vm2, %v144_v58  ;;  %2101 = vmatmul.msk.bf16.gmra.mxu3 %vm174_vm2, %v3098_v26  ;;  %v470_v58 = vunpack.c.l.b16 %v463_v56  ;;  %v617_v26 = vrot.slane %v3117_v45, 2 }
  0x30   :  { %v471_v63 = vpack.c.b16 %v470_v58, %v3132_v59  ;;  %v356_v59 = vsel %vm349_vm4, %v353_v60, %v355_v5  ;;  %v618_v24 = vsel %vm187_vm0, %v615_v10, %v617_v26 }
  0x32   :  { %v490_v53 = vshrl.u32 %v471_v63, 16  ;;  %v493_v1 = vshll.u32 %v471_v63, 16 }
  0x34   :  { %v492_v2 = vrot.slane %v490_v53, 1  ;;  %v495_v3 = vrot.slane %v493_v1, 2 }
  0x36   :  { %v496_v4 = vor.u32 %v495_v3, %v492_v2 }
  0x38   :  { %v497_v6 = vsel %vm472_vm3, %v487_v57, %v496_v4 }
  0x3c   :  { %2098 = vmatmul.msk.bf16.gmra.mxu2 %vm174_vm2, %v3117_v45 }
  0x3d   :  { %2074 = vmatmul.msk.bf16.gmra.mxu0 %vm174_vm2, %v152_v17 }
  0x3e   :  { %2078 = vmatmul.msk.bf16.gmra.mxu1 %vm174_vm2, %v152_v17  ;;  %2102 = vmatmul.msk.bf16.gmra.mxu3 %vm174_vm2, %v3117_v45 }
  0x4c   :  { %2099 = vmatmul.msk.bf16.gmra.mxu2 %vm174_vm2, %v250_v31 }
  0x4d   :  { %2075 = vmatmul.msk.bf16.gmra.mxu0 %vm174_vm2, %v155_v32 }
  0x4e   :  { %2079 = vmatmul.msk.bf16.gmra.mxu1 %vm174_vm2, %v155_v32  ;;  %2103 = vmatmul.msk.bf16.gmra.mxu3 %vm174_vm2, %v250_v31  ;;  %v619_v31 = vrot.slane %v471_v63, 2 }
  0x50   :  { %v620_v37 = vsel %vm187_vm0, %v617_v26, %v619_v31  ;;  %v2788_v26 = vld [vmem:[#allocation9 + $0xf4] sm:$0xf] }
  0x5c   :  { %2144 = vmatmul.msk.bf16.vlgmr.msrb.gmra.mxu2 %vm174_vm2, %v484_v46 }
  0x5d   :  { %2120 = vmatmul.msk.bf16.vlgmr.msrb.gmra.mxu0 %vm174_vm2, %v352_v47 }
  0x5e   :  { %2124 = vmatmul.msk.bf16.vlgmr.msrb.gmra.mxu1 %vm174_vm2, %v352_v47  ;;  %2148 = vmatmul.msk.bf16.vlgmr.msrb.gmra.mxu3 %vm174_vm2, %v484_v46 }
  0x6c   :  { %2145 = vmatmul.msk.bf16.gmra.mxu2 %vm174_vm2, %v488_v62 }
  0x6d   :  { %2121 = vmatmul.msk.bf16.gmra.mxu0 %vm174_vm2, %v354_v0 }
  0x6e   :  { %2125 = vmatmul.msk.bf16.gmra.mxu1 %vm174_vm2, %v354_v0  ;;  %2149 = vmatmul.msk.bf16.gmra.mxu3 %vm174_vm2, %v488_v62 }
  0x7c   :  { %2146 = vmatmul.msk.bf16.gmra.mxu2 %vm174_vm2, %v497_v6 }
  0x7d   :  { %2122 = vmatmul.msk.bf16.gmra.mxu0 %vm174_vm2, %v356_v59 }
  0x7e   :  { %2126 = vmatmul.msk.bf16.gmra.mxu1 %vm174_vm2, %v356_v59  ;;  %2150 = vmatmul.msk.bf16.gmra.mxu3 %vm174_vm2, %v497_v6 }
  0x8c   :  { %2147 = vmatmul.msk.bf16.gmra.mxu2 %vm174_vm2, %v496_v4 }
  0x8d   :  { %2123 = vmatmul.msk.bf16.gmra.mxu0 %vm174_vm2, %v355_v5 }
  0x8e   :  { %2127 = vmatmul.msk.bf16.gmra.mxu1 %vm174_vm2, %v355_v5  ;;  %2151 = vmatmul.msk.bf16.gmra.mxu3 %vm174_vm2, %v496_v4 }
  0x9a   :  { %v203_v11 = vpop.f32.mrf.mxu0 }
  0x9b   :  { %v231_v12 = vpop.f32.mrf.mxu1 }
  0x9d   :  { %2168 = vmatmul.msk.bf16.vlgmr.msra.gmra.mxu0 %vm174_vm2, %v616_v13 }
  0x9e   :  { %2172 = vmatmul.msk.bf16.vlgmr.msra.gmra.mxu1 %vm174_vm2, %v616_v13 }
  0x9f   :  { %v293_v14 = vpop.f32.mrf.mxu2 }
  0xa0   :  { %v3213_v15 = vadd.f32 %v293_v14, %v203_v11  ;;  %v2234_v14 = vld [vmem:[#allocation9 + $0xf0] sm:$0xf] }
  0xa1   :  { %v321_v17 = vpop.f32.mrf.mxu3 }
  0xa2   :  { %v3215_v18 = vadd.f32 %v321_v17, %v231_v12  ;;  %v3217_v19 = vpop.f32.mrf.mxu0  ;;  %v2789_v17 = vld [vmem:[#allocation9 + $0xf4] sm:$0xf0] }
  0xa3   :  { %v3219_v16 = vpop.f32.mrf.mxu1 }
  0xa7   :  { %v3222_v20 = vpop.f32.mrf.mxu2 }
  0xa9   :  { %v3224_v21 = vpop.f32.mrf.mxu3 }
  0xaa   :  { %v208_v22 = vpop.f32.mrf.mxu0 }
  0xab   :  { %v236_v23 = vpop.f32.mrf.mxu1 }
  0xad   :  { %2169 = vmatmul.msk.bf16.gmra.mxu0 %vm174_vm2, %v618_v24 }
  0xae   :  { %2173 = vmatmul.msk.bf16.gmra.mxu1 %vm174_vm2, %v618_v24 }
  0xaf   :  { %v298_v25 = vpop.f32.mrf.mxu2 }
  0xb0   :  { %v3229_v27 = vadd.f32 %v298_v25, %v208_v22  ;;  %v2235_v22 = vor.u32 %v2789_v17, %v2234_v14 }
  0xb1   :  { %v326_v28 = vpop.f32.mrf.mxu3 }
  0xb2   :  { %v3231_v29 = vadd.f32 %v326_v28, %v236_v23  ;;  %v3233_v30 = vpop.f32.mrf.mxu0  ;;  %v2236_v23 = vld [vmem:[#allocation9 + $0xf8] sm:$0xf0]  ;;  %905 = vmatpush.bf16.msra.mxu2 %v2235_v22 }
  0xb3   :  { %v3235_v45 = vpop.f32.mrf.mxu1  ;;  %v2239_v24 = vor.u32 %v2788_v26, %v2236_v23  ;;  %v2784_v26 = vld [vmem:[#allocation9 + $0xd4] sm:$0xf]  ;;  %v2220_v22 = vld [vmem:[#allocation9 + $0xd8] sm:$0xf0] }
  0xb5   :  { %923 = vmatpush.bf16.msra.mxu3 %v2239_v24 }
  0xb7   :  { %v3237_v32 = vpop.f32.mrf.mxu2 }
  0xb9   :  { %v3239_v34 = vpop.f32.mrf.mxu3 }
  0xba   :  { %v213_v35 = vpop.f32.mrf.mxu0 }
  0xbb   :  { %v241_v36 = vpop.f32.mrf.mxu1 }
  0xbd   :  { %2170 = vmatmul.msk.bf16.gmra.mxu0 %vm174_vm2, %v620_v37 }
  0xbe   :  { %2174 = vmatmul.msk.bf16.gmra.mxu1 %vm174_vm2, %v620_v37 }
  0xbf   :  { %v303_v38 = vpop.f32.mrf.mxu2 }
  0xc0   :  { %v3244_v39 = vadd.f32 %v303_v38, %v213_v35 }
  0xc1   :  { %v331_v40 = vpop.f32.mrf.mxu3 }
  0xc2   :  { %v3246_v41 = vadd.f32 %v331_v40, %v241_v36  ;;  %v3248_v42 = vpop.f32.mrf.mxu0 }
  0xc3   :  { %v3250_v43 = vpop.f32.mrf.mxu1 }
  0xc7   :  { %v3252_v44 = vpop.f32.mrf.mxu2 }
  0xc9   :  { %v3254_v46 = vpop.f32.mrf.mxu3 }
  0xca   :  { %v218_v47 = vpop.f32.mrf.mxu0 }
  0xcb   :  { %v246_v33 = vpop.f32.mrf.mxu1 }
  0xcd   :  { %2171 = vmatmul.msk.bf16.gmra.mxu0 %vm174_vm2, %v619_v31 }
  0xce   :  { %2175 = vmatmul.msk.bf16.gmra.mxu1 %vm174_vm2, %v619_v31 }
  0xcf   :  { %v308_v48 = vpop.f32.mrf.mxu2 }
  0xd0   :  { %v3258_v49 = vadd.f32 %v308_v48, %v218_v47  ;;  %v2226_v47 = vld [vmem:[#allocation9 + $0xe0] sm:$0xf]  ;;  %v2786_v48 = vld [vmem:[#allocation9 + $0xe4] sm:$0xf] }
  0xd1   :  { %v336_v50 = vpop.f32.mrf.mxu3 }
  0xd2   :  { %v3260_v51 = vadd.f32 %v336_v50, %v246_v33  ;;  %v220_v52 = vpop.f32.mrf.mxu0  ;;  %v2787_v33 = vld [vmem:[#allocation9 + $0xe4] sm:$0xf0] }
  0xd3   :  { %v248_v54 = vpop.f32.mrf.mxu1  ;;  %v2227_v50 = vor.u32 %v2787_v33, %v2226_v47  ;;  %v2228_v52 = vld [vmem:[#allocation9 + $0xe8] sm:$0xf0] }
  0xd4   :  { %3585 = vst [vmem:[#allocation16_spill] sm:$0xff] %v3260_v51  ;;  %v2218_v54 = vld [vmem:[#allocation9 + $0xd0] sm:$0xf]  ;;  %v2231_v17 = vor.u32 %v2786_v48, %v2228_v52  ;;  %v2364_v52 = vld [vmem:[#allocation9 + $0x178] sm:$0xf0] }
  0xd5   :  { %906 = vmatpush.bf16.msra.mxu2 %v2227_v50 }
  0xd6   :  { %924 = vmatpush.bf16.msra.mxu3 %v2231_v17 }
  0xd7   :  { %v310_v55 = vpop.f32.mrf.mxu2 }
  0xd8   :  { %v2785_v55 = vld [vmem:[#allocation9 + $0xd4] sm:$0xf0] }
  0xd9   :  { %v338_v56 = vpop.f32.mrf.mxu3  ;;  %v2219_v24 = vor.u32 %v2785_v55, %v2218_v54 }
  0xda   :  { %v402_v57 = vpop.f32.mrf.mxu0 }
  0xdb   :  { %v430_v58 = vpop.f32.mrf.mxu1  ;;  %v449_v56 = vadd.f32 %v402_v57, %v3213_v15  ;;  %v3315_v15 = vld [vmem:[%s3575_s2] ss:$0 sm:$0xff]  ;;  %907 = vmatpush.bf16.msra.mxu2 %v2219_v24  ;;  %v324_v57 = vadd.f32 %v3224_v21, %v3219_v16  ;;  %v2210_v24 = vld [vmem:[#allocation9 + $0xc0] sm:$0xf] }
  0xdc   :  { %v450_v14 = vadd.f32 %v430_v58, %v3215_v18  ;;  %v296_v18 = vadd.f32 %v3222_v20, %v3217_v19 }
  0xdf   :  { %v543_v60 = vpop.f32.mrf.mxu2 }
  0xe1   :  { %v571_v62 = vpop.f32.mrf.mxu3 }
  0xe2   :  { %v3262_v63 = vpop.f32.mrf.mxu0 }
  0xe3   :  { %v3264_v0 = vpop.f32.mrf.mxu1 }
  0xe7   :  { %v3266_v53 = vpop.f32.mrf.mxu2 }
  0xe9   :  { %v3268_v1 = vpop.f32.mrf.mxu3 }
  0xea   :  { %v3270_v2 = vpop.f32.mrf.mxu0 }
  0xeb   :  { %v3272_v3 = vpop.f32.mrf.mxu1 }
  0xef   :  { %v3274_v4 = vpop.f32.mrf.mxu2 }
  0xf1   :  { %v3276_v5 = vpop.f32.mrf.mxu3 }
  0xf2   :  { %v3278_v6 = vpop.f32.mrf.mxu0 }
  0xf3   :  { %v3280_v59 = vpop.f32.mrf.mxu1 }
  0xf7   :  { %v3282_v7 = vpop.f32.mrf.mxu2 }
  0xf9   :  { %v3284_v61 = vpop.f32.mrf.mxu3 }
  0xfa   :  { %v3286_v8 = vpop.f32.mrf.mxu0 }
  0xfb   :  { %v3288_v9 = vpop.f32.mrf.mxu1 }
  0xff   :  { %v3290_v10 = vpop.f32.mrf.mxu2 }
 0x101   :  { %v3292_v11 = vpop.f32.mrf.mxu3 }
 0x102   :  { %v3294_v12 = vpop.f32.mrf.mxu0 }
 0x103   :  { %v3296_v13 = vpop.f32.mrf.mxu1 }
 0x107   :  { %v3298_v25 = vpop.f32.mrf.mxu2 }
 0x109   :  { %v3300_v28 = vpop.f32.mrf.mxu3 }
 0x10a   :  { %v3302_v31 = vpop.f32.mrf.mxu0 }
 0x10b   :  { %v3304_v35 = vpop.f32.mrf.mxu1 }
 0x10c   :  { %3586 = vst [vmem:[#allocation17_spill] sm:$0xff] %v3304_v35 }
 0x10f   :  { %v3306_v36 = vpop.f32.mrf.mxu2 }
 0x110   :  { %3587 = vst [vmem:[#allocation18_spill] sm:$0xff] %v3306_v36 }
 0x111   :  { %v3308_v37 = vpop.f32.mrf.mxu3 }
 0x112   :  { %3588 = vst [vmem:[#allocation19_spill] sm:$0xff] %v3308_v37  ;;  %v419_v38 = vpop.f32.mrf.mxu0  ;;  %v590_v37 = vadd.f32 %v543_v60, %v449_v56  ;;  %v2362_v60 = vld [vmem:[#allocation9 + $0x170] sm:$0xf]  ;;  %v2803_v56 = vld [vmem:[#allocation9 + $0x164] sm:$0xf0] }
 0x113   :  { %v447_v40 = vpop.f32.mrf.mxu1  ;;  %v591_v38 = vadd.f32 %v571_v62, %v450_v14  ;;  %v2805_v62 = vld [vmem:[#allocation9 + $0x174] sm:$0xf0]  ;;  %v2802_v14 = vld [vmem:[#allocation9 + $0x164] sm:$0xf] }
 0x114   :  { %v2223_v40 = vor.u32 %v2784_v26, %v2220_v22  ;;  %v2363_v50 = vor.u32 %v2805_v62, %v2362_v60  ;;  %v2356_v26 = vld [vmem:[#allocation9 + $0x168] sm:$0xf0]  ;;  %v2780_v62 = vld [vmem:[#allocation9 + $0xb4] sm:$0xf] }
 0x115   :  { %v2359_v22 = vor.u32 %v2802_v14, %v2356_v26  ;;  %v2340_v14 = vld [vmem:[#allocation9 + $0x148] sm:$0xf0] }
 0x116   :  { %925 = vmatpush.bf16.msra.mxu3 %v2223_v40  ;;  %1159 = vmatpush.bf16.msrb.mxu0 %v2363_v50  ;;  %v454_v40 = vadd.f32 %v3272_v3, %v3231_v29  ;;  %v2800_v50 = vld [vmem:[#allocation9 + $0x154] sm:$0xf]  ;;  %v2348_v29 = vld [vmem:[#allocation9 + $0x158] sm:$0xf0] }
 0x117   :  { %v560_v23 = vpop.f32.mrf.mxu2 }
 0x119   :  { %v588_v36 = vpop.f32.mrf.mxu3 }
 0x11a   :  { %v666_v35 = vpop.f32.mrf.mxu0  ;;  %v2804_v36 = vld [vmem:[#allocation9 + $0x174] sm:$0xf] }
 0x11b   :  { %v694_v47 = vpop.f32.mrf.mxu1  ;;  %v713_v33 = vadd.f32 %v666_v35, %v590_v37  ;;  %v451_v35 = vadd.f32 %v3262_v63, %v296_v18  ;;  %v452_v37 = vadd.f32 %v3264_v0, %v324_v57  ;;  %v2367_v54 = vor.u32 %v2804_v36, %v2364_v52  ;;  %v2202_v18 = vld [vmem:[#allocation9 + $0xb0] sm:$0xf]  ;;  %v2781_v57 = vld [vmem:[#allocation9 + $0xb4] sm:$0xf0]  ;;  %v2204_v36 = vld [vmem:[#allocation9 + $0xb8] sm:$0xf0] }
 0x11c   :  { %v714_v51 = vadd.f32 %v694_v47, %v591_v38  ;;  %v2783_v38 = vld [vmem:[#allocation9 + $0xc4] sm:$0xf0]  ;;  %v2207_v52 = vor.u32 %v2780_v62, %v2204_v36 }
 0x11d   :  { %v592_v55 = vadd.f32 %v3266_v53, %v451_v35  ;;  %v593_v19 = vadd.f32 %v3268_v1, %v452_v37  ;;  %1177 = vmatpush.bf16.msrb.mxu1 %v2367_v54  ;;  %v2782_v53 = vld [vmem:[#allocation9 + $0xc4] sm:$0xf]  ;;  %v453_v1 = vadd.f32 %v3270_v2, %v3229_v27  ;;  %v2211_v47 = vor.u32 %v2783_v38, %v2210_v24  ;;  %v2346_v35 = vld [vmem:[#allocation9 + $0x150] sm:$0xf]  ;;  %v2801_v2 = vld [vmem:[#allocation9 + $0x154] sm:$0xf0] }
 0x11e   :  { %v727_v58 = vmax.f32 %v713_v33, %v714_v51  ;;  %v2354_v51 = vld [vmem:[#allocation9 + $0x160] sm:$0xf]  ;;  %v2212_v33 = vld [vmem:[#allocation9 + $0xc8] sm:$0xf0]  ;;  %v2203_v27 = vor.u32 %v2781_v57, %v2202_v18  ;;  %v2347_v54 = vor.u32 %v2801_v2, %v2346_v35  ;;  %v2797_v24 = vld [vmem:[#allocation9 + $0x134] sm:$0xf0] }
 0x11f   :  { %v2355_v17 = vor.u32 %v2803_v56, %v2354_v51  ;;  %v2215_v60 = vor.u32 %v2782_v53, %v2212_v33  ;;  %v594_v37 = vadd.f32 %v3274_v4, %v453_v1  ;;  %908 = vmatpush.bf16.msra.mxu2 %v2211_v47  ;;  %v2798_v51 = vld [vmem:[#allocation9 + $0x144] sm:$0xf]  ;;  %v2796_v38 = vld [vmem:[#allocation9 + $0x134] sm:$0xf]  ;;  %v2779_v36 = vld [vmem:[#allocation9 + $0xa4] sm:$0xf0] }
 0x120   :  { %v738_v48 = vadd.f32 %v3315_v15, %v727_v58  ;;  %v2778_v35 = vld [vmem:[#allocation9 + $0xa4] sm:$0xf] }
 0x121   :  { %1160 = vmatpush.bf16.msrb.mxu0 %v2355_v17  ;;  %1178 = vmatpush.bf16.msrb.mxu1 %v2359_v22  ;;  %v329_v17 = vadd.f32 %v3239_v34, %v3235_v45 }
 0x122   :  { %v745_v20 = vmax.f32 %v738_v48, 0.0  ;;  %v668_v16 = vpop.f32.mrf.mxu0  ;;  %v595_v48 = vadd.f32 %v3276_v5, %v454_v40  ;;  %926 = vmatpush.bf16.msra.mxu3 %v2215_v60 }
 0x123   :  { %v696_v21 = vpop.f32.mrf.mxu1  ;;  %v715_v63 = vadd.f32 %v668_v16, %v592_v55  ;;  %v2351_v55 = vor.u32 %v2800_v50, %v2348_v29  ;;  %v2338_v16 = vld [vmem:[#allocation9 + $0x140] sm:$0xf]  ;;  %909 = vmatpush.bf16.msra.mxu2 %v2203_v27  ;;  %v456_v53 = vadd.f32 %v3280_v59, %v329_v17  ;;  %v2795_v27 = vld [vmem:[#allocation9 + $0x124] sm:$0xf0]  ;;  %v2186_v50 = vld [vmem:[#allocation9 + $0x90] sm:$0xf] }
 0x124   :  { %752 = vst [vmem:[#allocation2] sm:$0xff] %v745_v20  ;;  %v716_v0 = vadd.f32 %v696_v21, %v593_v19  ;;  %v2799_v21 = vld [vmem:[#allocation9 + $0x144] sm:$0xf0]  ;;  %v2777_v29 = vld [vmem:[#allocation9 + $0x94] sm:$0xf0] }
 0x125   :  { %1161 = vmatpush.bf16.msrb.mxu0 %v2347_v54  ;;  %1179 = vmatpush.bf16.msrb.mxu1 %v2351_v55  ;;  %v2339_v5 = vor.u32 %v2799_v21, %v2338_v16  ;;  %v597_v45 = vadd.f32 %v3284_v61, %v456_v53  ;;  %v2187_v54 = vor.u32 %v2777_v29, %v2186_v50  ;;  %v2776_v55 = vld [vmem:[#allocation9 + $0x94] sm:$0xf] }
 0x126   :  { %v728_v23 = vmax.f32 %v715_v63, %v716_v0  ;;  %v301_v63 = vadd.f32 %v3237_v32, %v3233_v30  ;;  %v2343_v0 = vor.u32 %v2798_v51, %v2340_v14  ;;  %927 = vmatpush.bf16.msra.mxu3 %v2207_v52  ;;  %v2332_v30 = vld [vmem:[#allocation9 + $0x138] sm:$0xf0]  ;;  %v457_v52 = vadd.f32 %v3286_v8, %v3244_v39  ;;  %v2314_v39 = vld [vmem:[#allocation9 + $0x110] sm:$0xf] }
 0x127   :  { %v2335_v32 = vor.u32 %v2796_v38, %v2332_v30  ;;  %v458_v16 = vadd.f32 %v3288_v9, %v3246_v41  ;;  %v2791_v30 = vld [vmem:[#allocation9 + $0x104] sm:$0xf0] }
 0x128   :  { %v739_v58 = vadd.f32 %v3315_v15, %v728_v23  ;;  %v455_v22 = vadd.f32 %v3278_v6, %v301_v63  ;;  %v2330_v23 = vld [vmem:[#allocation9 + $0x130] sm:$0xf]  ;;  %v2774_v63 = vld [vmem:[#allocation9 + $0x84] sm:$0xf]  ;;  %v598_v8 = vadd.f32 %v3290_v10, %v457_v52 }
 0x129   :  { %1162 = vmatpush.bf16.msrb.mxu0 %v2339_v5  ;;  %1180 = vmatpush.bf16.msrb.mxu1 %v2343_v0  ;;  %v2331_v40 = vor.u32 %v2797_v24, %v2330_v23  ;;  %v2775_v5 = vld [vmem:[#allocation9 + $0x84] sm:$0xf0]  ;;  %v2180_v0 = vld [vmem:[#allocation9 + $0x88] sm:$0xf0]  ;;  %v599_v17 = vadd.f32 %v3292_v11, %v458_v16  ;;  %v2792_v23 = vld [vmem:[#allocation9 + $0x114] sm:$0xf] }
 0x12a   :  { %v746_v3 = vmax.f32 %v739_v58, 0.0  ;;  %v671_v19 = vpop.f32.mrf.mxu0  ;;  %v596_v47 = vadd.f32 %v3282_v7, %v455_v22  ;;  %v2194_v58 = vld [vmem:[#allocation9 + $0xa0] sm:$0xf]  ;;  %v2793_v22 = vld [vmem:[#allocation9 + $0x114] sm:$0xf0]  ;;  %v2183_v38 = vor.u32 %v2774_v63, %v2180_v0 }
 0x12b   :  { %v699_v20 = vpop.f32.mrf.mxu1  ;;  %v717_v56 = vadd.f32 %v671_v19, %v594_v37  ;;  %v2195_v37 = vor.u32 %v2779_v36, %v2194_v58  ;;  %v2322_v7 = vld [vmem:[#allocation9 + $0x120] sm:$0xf]  ;;  %v2188_v19 = vld [vmem:[#allocation9 + $0x98] sm:$0xf0]  ;;  %v2315_v53 = vor.u32 %v2793_v22, %v2314_v39  ;;  %v2308_v11 = vld [vmem:[#allocation9 + $0x108] sm:$0xf0] }
 0x12c   :  { %753 = vst [vmem:[#allocation2 + $0x8] sm:$0xff] %v746_v3  ;;  %v718_v4 = vadd.f32 %v699_v20, %v595_v48  ;;  %v2196_v48 = vld [vmem:[#allocation9 + $0xa8] sm:$0xf0]  ;;  %v2323_v3 = vor.u32 %v2795_v27, %v2322_v7  ;;  %v2794_v20 = vld [vmem:[#allocation9 + $0x124] sm:$0xf]  ;;  %v2191_v51 = vor.u32 %v2776_v55, %v2188_v19 }
 0x12d   :  { %1163 = vmatpush.bf16.msrb.mxu0 %v2331_v40  ;;  %1181 = vmatpush.bf16.msrb.mxu1 %v2335_v32  ;;  %v2199_v2 = vor.u32 %v2778_v35, %v2196_v48  ;;  %v2306_v40 = vld [vmem:[#allocation9 + $0x100] sm:$0xf]  ;;  %v2298_v58 = vld [vmem:[#allocation9 + $0x70] sm:$0xf]  ;;  %v2300_v7 = vld [vmem:[#allocation9 + $0x78] sm:$0xf0] }
 0x12e   :  { %v729_v26 = vmax.f32 %v717_v56, %v718_v4  ;;  %910 = vmatpush.bf16.msra.mxu2 %v2195_v37  ;;  %v2324_v56 = vld [vmem:[#allocation9 + $0x128] sm:$0xf0]  ;;  %v2178_v4 = vld [vmem:[#allocation9 + $0x80] sm:$0xf]  ;;  %v2836_v27 = vld [vmem:[#allocation9 + $0x274] sm:$0xf] }
 0x12f   :  { %928 = vmatpush.bf16.msra.mxu3 %v2199_v2  ;;  %v2327_v14 = vor.u32 %v2794_v20, %v2324_v56  ;;  %v2179_v24 = vor.u32 %v2775_v5, %v2178_v4  ;;  %v2290_v2 = vld [vmem:[#allocation9 + $0x60] sm:$0xf]  ;;  %v2770_v52 = vld [vmem:[#allocation9 + $0x64] sm:$0xf]  ;;  %v2835_v4 = vld [vmem:[#allocation9 + $0x264] sm:$0xf0] }
 0x130   :  { %v740_v1 = vadd.f32 %v3315_v15, %v729_v26  ;;  %v2834_v63 = vld [vmem:[#allocation9 + $0x264] sm:$0xf]  ;;  %v2484_v0 = vld [vmem:[#allocation9 + $0x268] sm:$0xf0]  ;;  %v2282_v39 = vld [vmem:[#allocation9 + $0x50] sm:$0xf] }
 0x131   :  { %1164 = vmatpush.bf16.msrb.mxu0 %v2323_v3  ;;  %1182 = vmatpush.bf16.msrb.mxu1 %v2327_v14  ;;  %v2771_v3 = vld [vmem:[#allocation9 + $0x64] sm:$0xf0]  ;;  %v2768_v22 = vld [vmem:[#allocation9 + $0x54] sm:$0xf] }
 0x132   :  { %v747_v34 = vmax.f32 %v740_v1, 0.0  ;;  %v673_v6 = vpop.f32.mrf.mxu0  ;;  %911 = vmatpush.bf16.msra.mxu2 %v2187_v54  ;;  %v2316_v1 = vld [vmem:[#allocation9 + $0x118] sm:$0xf0]  ;;  %v2291_v16 = vor.u32 %v2771_v3, %v2290_v2 }
 0x133   :  { %v759_v33 = vld [vmem:[#allocation2] ss:$2 sm:$0xff]  ;;  %v767_v18 = vld [vmem:[#allocation2 + $0x1] ss:$2 sm:$0xff]  ;;  %v701_v57 = vpop.f32.mrf.mxu1  ;;  %v719_v59 = vadd.f32 %v673_v6, %v596_v47  ;;  %929 = vmatpush.bf16.msra.mxu3 %v2191_v51  ;;  %v2319_v10 = vor.u32 %v2792_v23, %v2316_v1  ;;  %v461_v23 = vadd.f32 %v3302_v31, %v3258_v49  ;;  %v2766_v49 = vld [vmem:[#allocation9 + $0x44] sm:$0xf] }
 0x134   :  { %v3342_v60 = vmax.f32 %v759_v33, %v767_v18  ;;  %754 = vst [vmem:[#allocation2 + $0x10] sm:$0xff] %v747_v34  ;;  %v720_v62 = vadd.f32 %v701_v57, %v597_v45  ;;  %v2790_v45 = vld [vmem:[#allocation9 + $0x104] sm:$0xf]  ;;  %v2307_v34 = vor.u32 %v2791_v30, %v2306_v40  ;;  %v306_v33 = vadd.f32 %v3252_v44, %v3248_v42  ;;  %v2490_v42 = vld [vmem:[#allocation9 + $0x270] sm:$0xf] }
 0x135   :  { %1165 = vmatpush.bf16.msrb.mxu0 %v2315_v53  ;;  %v334_v18 = vadd.f32 %v3254_v46, %v3250_v43  ;;  %1183 = vmatpush.bf16.msrb.mxu1 %v2319_v10  ;;  %v2311_v57 = vor.u32 %v2790_v45, %v2308_v11  ;;  %v2837_v44 = vld [vmem:[#allocation9 + $0x274] sm:$0xf0]  ;;  %v2284_v53 = vld [vmem:[#allocation9 + $0x58] sm:$0xf0]  ;;  %v2474_v1 = vld [vmem:[#allocation9 + $0x250] sm:$0xf] }
 0x136   :  { %778 = vst [vmem:[#allocation3] sm:$0xff] %v3342_v60  ;;  %v730_v61 = vmax.f32 %v719_v59, %v720_v62  ;;  %912 = vmatpush.bf16.msra.mxu2 %v2179_v24  ;;  %v2773_v59 = vld [vmem:[#allocation9 + $0x74] sm:$0xf0]  ;;  %v2772_v62 = vld [vmem:[#allocation9 + $0x74] sm:$0xf]  ;;  %v459_v36 = vadd.f32 %v3294_v12, %v306_v33  ;;  %v2491_v46 = vor.u32 %v2837_v44, %v2490_v42 }
 0x137   :  { %v460_v35 = vadd.f32 %v3296_v13, %v334_v18  ;;  %930 = vmatpush.bf16.msra.mxu3 %v2183_v38  ;;  %v2299_v48 = vor.u32 %v2773_v59, %v2298_v58  ;;  %v2303_v43 = vor.u32 %v2772_v62, %v2300_v7  ;;  %v2833_v40 = vld [vmem:[#allocation9 + $0x254] sm:$0xf0]  ;;  %v2832_v10 = vld [vmem:[#allocation9 + $0x254] sm:$0xf]  ;;  %v2476_v45 = vld [vmem:[#allocation9 + $0x258] sm:$0xf0] }
 0x138   :  { %v741_v21 = vadd.f32 %v3315_v15, %v730_v61  ;;  %v2492_v61 = vld [vmem:[#allocation9 + $0x278] sm:$0xf0]  ;;  %v600_v50 = vadd.f32 %v3298_v25, %v459_v36  ;;  %v2274_v11 = vld [vmem:[#allocation9 + $0x40] sm:$0xf]  ;;  %v2767_v33 = vld [vmem:[#allocation9 + $0x44] sm:$0xf0] }
 0x139   :  { %1166 = vmatpush.bf16.msrb.mxu0 %v2307_v34  ;;  %v601_v29 = vadd.f32 %v3300_v28, %v460_v35  ;;  %v2495_v13 = vor.u32 %v2836_v27, %v2492_v61  ;;  %1184 = vmatpush.bf16.msrb.mxu1 %v2311_v57  ;;  %v2482_v28 = vld [vmem:[#allocation9 + $0x260] sm:$0xf]  ;;  %v2479_v34 = vor.u32 %v2832_v10, %v2476_v45  ;;  %v2276_v31 = vld [vmem:[#allocation9 + $0x48] sm:$0xf0]  ;;  %v3591_v18 = vld [vmem:[#allocation18_spill] sm:$0xff] }
 0x13a   :  { %v748_v26 = vmax.f32 %v741_v21, 0.0  ;;  %v676_v41 = vpop.f32.mrf.mxu0  ;;  %1021 = vmatpush.bf16.msrb.mxu2 %v2299_v48  ;;  %v2292_v21 = vld [vmem:[#allocation9 + $0x68] sm:$0xf0]  ;;  %v2483_v14 = vor.u32 %v2835_v4, %v2482_v28  ;;  %v3592_v57 = vld [vmem:[#allocation19_spill] sm:$0xff]  ;;  %v2275_v62 = vor.u32 %v2767_v33, %v2274_v11  ;;  %v2831_v35 = vld [vmem:[#allocation9 + $0x244] sm:$0xf0]  ;;  %v2279_v7 = vor.u32 %v2766_v49, %v2276_v31 }
 0x13b   :  { %v704_v9 = vpop.f32.mrf.mxu1  ;;  %v721_v32 = vadd.f32 %v676_v41, %v598_v8  ;;  %1039 = vmatpush.bf16.msrb.mxu3 %v2303_v43  ;;  %v2295_v5 = vor.u32 %v2770_v52, %v2292_v21  ;;  %v3589_v41 = vld [vmem:[#allocation16_spill] sm:$0xff]  ;;  %v2468_v43 = vld [vmem:[#allocation9 + $0x248] sm:$0xf0]  ;;  %v2268_v52 = vld [vmem:[#allocation9 + $0x38] sm:$0xf0] }
 0x13c   :  { %755 = vst [vmem:[#allocation2 + $0x18] sm:$0xff] %v748_v26  ;;  %v722_v47 = vadd.f32 %v704_v9, %v599_v17  ;;  %v2487_v17 = vor.u32 %v2834_v63, %v2484_v0  ;;  %v2769_v26 = vld [vmem:[#allocation9 + $0x54] sm:$0xf0]  ;;  %v3590_v9 = vld [vmem:[#allocation17_spill] sm:$0xff]  ;;  %v2466_v36 = vld [vmem:[#allocation9 + $0x240] sm:$0xf] }
 0x13d   :  { %1447 = vmatpush.bf16.msra.mxu0 %v2491_v46  ;;  %1465 = vmatpush.bf16.msra.mxu1 %v2495_v13  ;;  %v462_v24 = vadd.f32 %v3590_v9, %v3589_v41  ;;  %v2283_v38 = vor.u32 %v2769_v26, %v2282_v39  ;;  %v2467_v42 = vor.u32 %v2831_v35, %v2466_v36  ;;  %v2830_v44 = vld [vmem:[#allocation9 + $0x244] sm:$0xf]  ;;  %v2460_v21 = vld [vmem:[#allocation9 + $0x238] sm:$0xf0]  ;;  %v2763_v4 = vld [vmem:[#allocation9 + $0x24] sm:$0xf0] }
 0x13e   :  { %v731_v6 = vmax.f32 %v721_v32, %v722_v47  ;;  %1022 = vmatpush.bf16.msrb.mxu2 %v2291_v16  ;;  %v2287_v32 = vor.u32 %v2768_v22, %v2284_v53  ;;  %v2475_v47 = vor.u32 %v2833_v40, %v2474_v1  ;;  %v2471_v61 = vor.u32 %v2830_v44, %v2468_v43  ;;  %v2828_v16 = vld [vmem:[#allocation9 + $0x234] sm:$0xf]  ;;  %v2450_v22 = vld [vmem:[#allocation9 + $0x220] sm:$0xf]  ;;  %v2826_v9 = vld [vmem:[#allocation9 + $0x224] sm:$0xf] }
 0x13f   :  { %1040 = vmatpush.bf16.msrb.mxu3 %v2295_v5  ;;  %v603_v58 = vadd.f32 %v3592_v57, %v462_v24  ;;  %v2463_v28 = vor.u32 %v2828_v16, %v2460_v21  ;;  %v2762_v5 = vld [vmem:[#allocation9 + $0x24] sm:$0xf]  ;;  %v2452_v24 = vld [vmem:[#allocation9 + $0x228] sm:$0xf0]  ;;  %v2761_v1 = vld [vmem:[#allocation9 + $0x14] sm:$0xf0] }
 0x140   :  { %v742_v37 = vadd.f32 %v3315_v15, %v731_v6  ;;  %v602_v6 = vadd.f32 %v3591_v18, %v461_v23  ;;  %v2827_v23 = vld [vmem:[#allocation9 + $0x224] sm:$0xf0]  ;;  %v2455_v53 = vor.u32 %v2826_v9, %v2452_v24  ;;  %v2760_v40 = vld [vmem:[#allocation9 + $0x14] sm:$0xf]  ;;  %v2825_v10 = vld [vmem:[#allocation9 + $0x214] sm:$0xf0] }
 0x141   :  { %1448 = vmatpush.bf16.msra.mxu0 %v2483_v14  ;;  %1466 = vmatpush.bf16.msra.mxu1 %v2487_v17  ;;  %v2451_v41 = vor.u32 %v2827_v23, %v2450_v22  ;;  %v2444_v33 = vld [vmem:[#allocation9 + $0x218] sm:$0xf0]  ;;  %v2242_v49 = vld [vmem:[#allocation9] sm:$0xf]  ;;  %v2759_v18 = vld [vmem:[#allocation9 + $0x4] sm:$0xf0] }
 0x142   :  { %v749_v12 = vmax.f32 %v742_v37, 0.0  ;;  %v678_v19 = vpop.f32.mrf.mxu0  ;;  %1023 = vmatpush.bf16.msrb.mxu2 %v2283_v38  ;;  %v2250_v38 = vld [vmem:[#allocation9 + $0x10] sm:$0xf]  ;;  %v2244_v57 = vld [vmem:[#allocation9 + $0x8] sm:$0xf0] }
 0x143   :  { %v761_v54 = vld [vmem:[#allocation2 + $0x10] ss:$2 sm:$0xff]  ;;  %v769_v55 = vld [vmem:[#allocation2 + $0x11] ss:$2 sm:$0xff]  ;;  %v706_v20 = vpop.f32.mrf.mxu1  ;;  %v723_v56 = vadd.f32 %v678_v19, %v600_v50  ;;  %1041 = vmatpush.bf16.msrb.mxu3 %v2287_v32  ;;  %v2266_v50 = vld [vmem:[#allocation9 + $0x30] sm:$0xf] }
 0x144   :  { %v3361_v51 = vmax.f32 %v761_v54, %v769_v55  ;;  %756 = vst [vmem:[#allocation2 + $0x20] sm:$0xff] %v749_v12  ;;  %v724_v25 = vadd.f32 %v706_v20, %v601_v29  ;;  %v2765_v29 = vld [vmem:[#allocation9 + $0x34] sm:$0xf0]  ;;  %v2764_v12 = vld [vmem:[#allocation9 + $0x34] sm:$0xf] }
 0x145   :  { %1449 = vmatpush.bf16.msra.mxu0 %v2475_v47  ;;  %1467 = vmatpush.bf16.msra.mxu1 %v2479_v34  ;;  %v2267_v3 = vor.u32 %v2765_v29, %v2266_v50  ;;  %v2458_v54 = vld [vmem:[#allocation9 + $0x230] sm:$0xf]  ;;  %v2829_v55 = vld [vmem:[#allocation9 + $0x234] sm:$0xf0]  ;;  %v2271_v19 = vor.u32 %v2764_v12, %v2268_v52  ;;  %v2252_v32 = vld [vmem:[#allocation9 + $0x18] sm:$0xf0] }
 0x146   :  { %779 = vst [vmem:[#allocation3 + $0x8] sm:$0xff] %v3361_v51  ;;  %v732_v8 = vmax.f32 %v723_v56, %v724_v25  ;;  %1024 = vmatpush.bf16.msrb.mxu2 %v2275_v62  ;;  %v2459_v20 = vor.u32 %v2829_v55, %v2458_v54  ;;  %v2258_v56 = vld [vmem:[#allocation9 + $0x20] sm:$0xf]  ;;  %v2442_v47 = vld [vmem:[#allocation9 + $0x210] sm:$0xf]  ;;  %v2255_v45 = vor.u32 %v2760_v40, %v2252_v32 }
 0x147   :  { %1042 = vmatpush.bf16.msrb.mxu3 %v2279_v7  ;;  %v2259_v39 = vor.u32 %v2763_v4, %v2258_v56  ;;  %v2443_v11 = vor.u32 %v2825_v10, %v2442_v47  ;;  %v2824_v34 = vld [vmem:[#allocation9 + $0x214] sm:$0xf]  ;;  %v2823_v62 = vld [vmem:[#allocation9 + $0x204] sm:$0xf0]  ;;  %v2822_v36 = vld [vmem:[#allocation9 + $0x204] sm:$0xf] }
 0x148   :  { %v743_v30 = vadd.f32 %v3315_v15, %v732_v8  ;;  %v2260_v8 = vld [vmem:[#allocation9 + $0x28] sm:$0xf0]  ;;  %v2447_v31 = vor.u32 %v2824_v34, %v2444_v33  ;;  %v2426_v12 = vld [vmem:[#allocation9 + $0x1f0] sm:$0xf]  ;;  %v2428_v54 = vld [vmem:[#allocation9 + $0x1f8] sm:$0xf0] }
 0x149   :  { %1450 = vmatpush.bf16.msra.mxu0 %v2467_v42  ;;  %1468 = vmatpush.bf16.msra.mxu1 %v2471_v61  ;;  %v2263_v26 = vor.u32 %v2762_v5, %v2260_v8  ;;  %v2436_v44 = vld [vmem:[#allocation9 + $0x208] sm:$0xf0]  ;;  %v2818_v16 = vld [vmem:[#allocation9 + $0x1e4] sm:$0xf]  ;;  %v2817_v4 = vld [vmem:[#allocation9 + $0x1d4] sm:$0xf0] }
 0x14a   :  { %v750_v59 = vmax.f32 %v743_v30, 0.0  ;;  %v681_v37 = vpop.f32.mrf.mxu0  ;;  %1025 = vmatpush.bf16.msrb.mxu2 %v2267_v3  ;;  %v2251_v30 = vor.u32 %v2761_v1, %v2250_v38  ;;  %v2439_v29 = vor.u32 %v2822_v36, %v2436_v44  ;;  %v2820_v3 = vld [vmem:[#allocation9 + $0x1f4] sm:$0xf]  ;;  %v2420_v21 = vld [vmem:[#allocation9 + $0x1e8] sm:$0xf0]  ;;  %v785_v44 = vpack.c.bf16 %v3361_v51, %v3342_v60 }
 0x14b   :  { %v709_v48 = vpop.f32.mrf.mxu1  ;;  %v725_v46 = vadd.f32 %v681_v37, %v602_v6  ;;  %1043 = vmatpush.bf16.msrb.mxu3 %v2271_v19  ;;  %v2758_v6 = vld [vmem:[#allocation9 + $0x4] sm:$0xf]  ;;  %v2431_v55 = vor.u32 %v2820_v3, %v2428_v54  ;;  %v2418_v19 = vld [vmem:[#allocation9 + $0x1e0] sm:$0xf]  ;;  %v2816_v5 = vld [vmem:[#allocation9 + $0x1d4] sm:$0xf] }
 0x14c   :  { %757 = vst [vmem:[#allocation2 + $0x28] sm:$0xff] %v750_v59  ;;  %v726_v27 = vadd.f32 %v709_v48, %v603_v58  ;;  %v2243_v58 = vor.u32 %v2759_v18, %v2242_v49  ;;  %v2434_v59 = vld [vmem:[#allocation9 + $0x200] sm:$0xf]  ;;  %v2247_v48 = vor.u32 %v2758_v6, %v2244_v57  ;;  %v2814_v8 = vld [vmem:[#allocation9 + $0x1c4] sm:$0xf] }
 0x14d   :  { %1451 = vmatpush.bf16.msra.mxu0 %v2459_v20  ;;  %1469 = vmatpush.bf16.msra.mxu1 %v2463_v28  ;;  %v803_v7 = vld [vmem:[#allocation3 + $0x1] sm:$0xff]  ;;  %v2435_v61 = vor.u32 %v2823_v62, %v2434_v59  ;;  %v2819_v20 = vld [vmem:[#allocation9 + $0x1e4] sm:$0xf0]  ;;  %v2396_v32 = vld [vmem:[#allocation9 + $0x1b8] sm:$0xf0] }
 0x14e   :  { %v733_v2 = vmax.f32 %v725_v46, %v726_v27  ;;  %1026 = vmatpush.bf16.msrb.mxu2 %v2259_v39  ;;  %v1057_v46 = vld [vmem:[#allocation3 + $0x2] sm:$0xff]  ;;  %v2419_v56 = vor.u32 %v2819_v20, %v2418_v19  ;;  %v2815_v39 = vld [vmem:[#allocation9 + $0x1c4] sm:$0xf0]  ;;  %v2386_v10 = vld [vmem:[#allocation9 + $0x1a0] sm:$0xf] }
 0x14f   :  { %1044 = vmatpush.bf16.msrb.mxu3 %v2263_v26  ;;  %v2410_v28 = vld [vmem:[#allocation9 + $0x1d0] sm:$0xf]  ;;  %v2404_v26 = vld [vmem:[#allocation9 + $0x1c8] sm:$0xf0]  ;;  %v2813_v1 = vld [vmem:[#allocation9 + $0x1b4] sm:$0xf0] }
 0x150   :  { %v744_v13 = vadd.f32 %v3315_v15, %v733_v2  ;;  %v2812_v40 = vld [vmem:[#allocation9 + $0x1b4] sm:$0xf]  ;;  %v2388_v34 = vld [vmem:[#allocation9 + $0x1a8] sm:$0xf0]  ;;  %v2809_v18 = vld [vmem:[#allocation9 + $0x194] sm:$0xf0] }
 0x151   :  { %1452 = vmatpush.bf16.msra.mxu0 %v2451_v41  ;;  %1470 = vmatpush.bf16.msra.mxu1 %v2455_v53  ;;  %v2407_v41 = vor.u32 %v2814_v8, %v2404_v26  ;;  %v2394_v53 = vld [vmem:[#allocation9 + $0x1b0] sm:$0xf]  ;;  %v2399_v47 = vor.u32 %v2812_v40, %v2396_v32  ;;  %v2808_v6 = vld [vmem:[#allocation9 + $0x194] sm:$0xf]  ;;  %v2380_v57 = vld [vmem:[#allocation9 + $0x198] sm:$0xf0] }
 0x152   :  { %v751_v25 = vmax.f32 %v744_v13, 0.0  ;;  %v683_v0 = vpop.f32.mrf.mxu0  ;;  %1027 = vmatpush.bf16.msrb.mxu2 %v2251_v30  ;;  %v2821_v13 = vld [vmem:[#allocation9 + $0x1f4] sm:$0xf0]  ;;  %v2395_v30 = vor.u32 %v2813_v1, %v2394_v53  ;;  %v2383_v59 = vor.u32 %v2808_v6, %v2380_v57  ;;  %v2370_v62 = vld [vmem:[#allocation9 + $0x180] sm:$0xf]  ;;  %v2861_v53 = vld [vmem:[%s3578_s5 + $0xb8] sm:$0xff] }
 0x153   :  { %v763_v14 = vld [vmem:[#allocation2 + $0x20] ss:$2 sm:$0xff]  ;;  %v771_v63 = vld [vmem:[#allocation2 + $0x21] ss:$2 sm:$0xff]  ;;  %v711_v15 = vpop.f32.mrf.mxu1  ;;  %1045 = vmatpush.bf16.msrb.mxu3 %v2255_v45  ;;  %v2427_v52 = vor.u32 %v2821_v13, %v2426_v12  ;;  %v2811_v45 = vld [vmem:[#allocation9 + $0x1a4] sm:$0xf0] }
 0x154   :  { %v3372_v17 = vmax.f32 %v763_v14, %v771_v63  ;;  %758 = vst [vmem:[#allocation2 + $0x30] sm:$0xff] %v751_v25  ;;  %v2423_v25 = vor.u32 %v2818_v16, %v2420_v21  ;;  %v2412_v14 = vld [vmem:[#allocation9 + $0x1d8] sm:$0xf0]  ;;  %v2411_v63 = vor.u32 %v2817_v4, %v2410_v28  ;;  %v2402_v15 = vld [vmem:[#allocation9 + $0x1c0] sm:$0xf]  ;;  %v2387_v33 = vor.u32 %v2811_v45, %v2386_v10 }
 0x155   :  { %1453 = vmatpush.bf16.msra.mxu0 %v2443_v11  ;;  %1471 = vmatpush.bf16.msra.mxu1 %v2447_v31  ;;  %v2415_v0 = vor.u32 %v2816_v5, %v2412_v14  ;;  %v2403_v23 = vor.u32 %v2815_v39, %v2402_v15  ;;  %v2810_v11 = vld [vmem:[#allocation9 + $0x1a4] sm:$0xf]  ;;  %v2378_v31 = vld [vmem:[#allocation9 + $0x190] sm:$0xf]  ;;  %v2807_v36 = vld [vmem:[#allocation9 + $0x184] sm:$0xf0] }
 0x156   :  { %780 = vst [vmem:[#allocation3 + $0x10] sm:$0xff] %v3372_v17  ;;  %1028 = vmatpush.bf16.msrb.mxu2 %v2243_v58  ;;  %v2391_v49 = vor.u32 %v2810_v11, %v2388_v34  ;;  %v2379_v58 = vor.u32 %v2809_v18, %v2378_v31  ;;  %v2852_v10 = vld [vmem:[%s3578_s5 + $0x70] sm:$0xff]  ;;  %v2859_v31 = vld [vmem:[%s3578_s5 + $0xa8] sm:$0xff] }
 0x157   :  { %1046 = vmatpush.bf16.msrb.mxu3 %v2247_v48  ;;  %v2371_v48 = vor.u32 %v2807_v36, %v2370_v62  ;;  %v2844_v45 = vld [vmem:[%s3578_s5 + $0x30] sm:$0xff]  ;;  %v2867_v57 = vld [vmem:[%s3578_s5 + $0xe8] sm:$0xff]  ;;  %v2850_v62 = vld [vmem:[%s3578_s5 + $0x60] sm:$0xff] }
 0x158   :  { %v2860_v11 = vld [vmem:[%s3578_s5 + $0xb0] sm:$0xff]  ;;  %v2842_v36 = vld [vmem:[%s3578_s5 + $0x20] sm:$0xff] }
 0x159   :  { %1454 = vmatpush.bf16.msra.mxu0 %v2435_v61  ;;  %1472 = vmatpush.bf16.msra.mxu1 %v2439_v29  ;;  %v786_v61 = vpack.c.bf16 %v3372_v17, %v3372_v17  ;;  %v1201_v29 = vld [vmem:[#allocation3 + $0x3] sm:$0xff]  ;;  %v2868_v34 = vld [vmem:[%s3578_s5 + $0xf0] sm:$0xff] }
 0x15b   :  { %v765_v35 = vld [vmem:[#allocation2 + $0x30] ss:$2 sm:$0xf]  ;;  %v773_v37 = vld [vmem:[#allocation2 + $0x31] ss:$2 sm:$0xf] }
 0x15c   :  { %v777_v42 = vmax.f32 %v765_v35, %v773_v37  ;;  %v2806_v35 = vld [vmem:[#allocation9 + $0x184] sm:$0xf]  ;;  %v2372_v37 = vld [vmem:[#allocation9 + $0x188] sm:$0xf0] }
 0x15d   :  { %v804_v43 = vld [vmem:[#allocation3 + $0x9] sm:$0xff] }
 0x15e   :  { %v1058_v27 = vld [vmem:[#allocation3 + $0xa] sm:$0xff]  ;;  %v806_v2 = vpack.c.bf16 %v804_v43, %v803_v7  ;;  %781 = vst [vmem:[#allocation3 + $0x18] sm:$0xf] %v777_v42  ;;  %v2375_v7 = vor.u32 %v2806_v35, %v2372_v37  ;;  %v2858_v35 = vld [vmem:[%s3578_s5 + $0xa0] sm:$0xff] }
 0x15f   :  { %v1060_v50 = vpack.c.bf16 %v1058_v27, %v1057_v46  ;;  %v1346_v42 = vld [vmem:[#allocation3 + $0xc] sm:$0xff]  ;;  %v1345_v43 = vld [vmem:[#allocation3 + $0x4] sm:$0xff] }
 0x160   :  { %913 = vmatmul.bf16.vlgmr.msra.gmra.mxu2 %v806_v2  ;;  %931 = vmatmul.bf16.vlgmr.msra.gmra.mxu3 %v806_v2  ;;  %v1348_v46 = vpack.c.bf16 %v1346_v42, %v1345_v43  ;;  %v2866_v37 = vld [vmem:[%s3578_s5 + $0xe0] sm:$0xff]  ;;  %v2849_v42 = vld [vmem:[%s3578_s5 + $0x58] sm:$0xff] }
 0x161   :  { %1167 = vmatmul.bf16.vlgmr.msrb.gmra.mxu0 %v1060_v50  ;;  %1185 = vmatmul.bf16.vlgmr.msrb.gmra.mxu1 %v1060_v50  ;;  %v1202_v50 = vld [vmem:[#allocation3 + $0xb] sm:$0xff]  ;;  %v2857_v43 = vld [vmem:[%s3578_s5 + $0x98] sm:$0xff] }
 0x162   :  { %1303 = vmatpush.bf16.msra.mxu2 %v2427_v52  ;;  %1321 = vmatpush.bf16.msra.mxu3 %v2431_v55  ;;  %v1204_v60 = vpack.c.bf16 %v1202_v50, %v1201_v29  ;;  %v3480_v29 = vld [vmem:[%s3577_s4] ss:$0 sm:$0xff] }
 0x163   :  { %1744 = vmatpush.bf16.msrb.mxu0 %v2861_v53  ;;  %v2846_v53 = vld [vmem:[%s3578_s5 + $0x40] sm:$0xff] }
 0x165   :  { %v805_v22 = vld [vmem:[#allocation3 + $0x11] sm:$0xff] }
 0x166   :  { %1304 = vmatpush.bf16.msra.mxu2 %v2419_v56  ;;  %1322 = vmatpush.bf16.msra.mxu3 %v2423_v25  ;;  %v1059_v9 = vld [vmem:[#allocation3 + $0x12] sm:$0xff]  ;;  %v807_v24 = vpack.c.bf16 %v805_v22, %v805_v22 }
 0x167   :  { %v1061_v38 = vpack.c.bf16 %v1059_v9, %v1059_v9  ;;  %v1347_v27 = vld [vmem:[#allocation3 + $0x14] sm:$0xff]  ;;  %1745 = vmatpush.bf16.msrb.mxu0 %v2860_v11 }
 0x168   :  { %v1349_v2 = vpack.c.bf16 %v1347_v27, %v1347_v27  ;;  %v1203_v51 = vld [vmem:[#allocation3 + $0x13] sm:$0xff] }
 0x169   :  { %v1205_v12 = vpack.c.bf16 %v1203_v51, %v1203_v51 }
 0x16a   :  { %1305 = vmatpush.bf16.msra.mxu2 %v2411_v63  ;;  %1323 = vmatpush.bf16.msra.mxu3 %v2415_v0 }
 0x16b   :  { %1746 = vmatpush.bf16.msrb.mxu0 %v2859_v31  ;;  %v2876_v31 = vld [vmem:[%s3580_s7 + $0x30] sm:$0xff] }
 0x16e   :  { %1306 = vmatpush.bf16.msra.mxu2 %v2403_v23  ;;  %1324 = vmatpush.bf16.msra.mxu3 %v2407_v41 }
 0x16f   :  { %1747 = vmatpush.bf16.msrb.mxu0 %v2858_v35 }
 0x170   :  { %918 = vmatmul.bf16.gmra.mxu2 %v807_v24  ;;  %936 = vmatmul.bf16.gmra.mxu3 %v807_v24  ;;  %v2853_v24 = vld [vmem:[%s3578_s5 + $0x78] sm:$0xff] }
 0x171   :  { %1172 = vmatmul.bf16.gmra.mxu0 %v1061_v38  ;;  %1190 = vmatmul.bf16.gmra.mxu1 %v1061_v38  ;;  %v2845_v38 = vld [vmem:[%s3578_s5 + $0x38] sm:$0xff] }
 0x172   :  { %1307 = vmatpush.bf16.msra.mxu2 %v2395_v30  ;;  %1325 = vmatpush.bf16.msra.mxu3 %v2399_v47  ;;  %v2869_v30 = vld [vmem:[%s3578_s5 + $0xf8] sm:$0xff] }
 0x173   :  { %1826 = vmatpush.bf16.msrb.mxu1 %v2869_v30  ;;  %1748 = vmatpush.bf16.msrb.mxu0 %v2857_v43  ;;  %v2838_v30 = vld [vmem:[%s3578_s5] sm:$0xff] }
 0x176   :  { %1308 = vmatpush.bf16.msra.mxu2 %v2387_v33  ;;  %1326 = vmatpush.bf16.msra.mxu3 %v2391_v49  ;;  %v2851_v33 = vld [vmem:[%s3578_s5 + $0x68] sm:$0xff] }
 0x177   :  { %1827 = vmatpush.bf16.msrb.mxu1 %v2868_v34  ;;  %v2843_v49 = vld [vmem:[%s3578_s5 + $0x28] sm:$0xff] }
 0x17a   :  { %1309 = vmatpush.bf16.msra.mxu2 %v2379_v58  ;;  %1327 = vmatpush.bf16.msra.mxu3 %v2383_v59 }
 0x17b   :  { %1828 = vmatpush.bf16.msrb.mxu1 %v2867_v57 }
 0x17e   :  { %1310 = vmatpush.bf16.msra.mxu2 %v2371_v48  ;;  %1328 = vmatpush.bf16.msra.mxu3 %v2375_v7 }
 0x17f   :  { %1829 = vmatpush.bf16.msrb.mxu1 %v2866_v37 }
 0x180   :  { %1029 = vmatmul.bf16.vlgmr.msrb.gmra.mxu2 %v785_v44  ;;  %1047 = vmatmul.bf16.vlgmr.msrb.gmra.mxu3 %v785_v44  ;;  %v2841_v44 = vld [vmem:[%s3578_s5 + $0x18] sm:$0xff] }
 0x181   :  { %1455 = vmatmul.bf16.vlgmr.msra.gmra.mxu0 %v1348_v46  ;;  %1473 = vmatmul.bf16.vlgmr.msra.gmra.mxu1 %v1348_v46 }
 0x182   :  { %1602 = vmatpush.bf16.msrb.mxu2 %v2853_v24  ;;  %1663 = vmatpush.bf16.msrb.mxu3 %v2845_v38 }
 0x186   :  { %1603 = vmatpush.bf16.msrb.mxu2 %v2852_v10  ;;  %1664 = vmatpush.bf16.msrb.mxu3 %v2844_v45 }
 0x18a   :  { %1604 = vmatpush.bf16.msrb.mxu2 %v2851_v33  ;;  %1665 = vmatpush.bf16.msrb.mxu3 %v2843_v49 }
 0x18e   :  { %1605 = vmatpush.bf16.msrb.mxu2 %v2850_v62  ;;  %1666 = vmatpush.bf16.msrb.mxu3 %v2842_v36 }
 0x190   :  { %1034 = vmatmul.bf16.gmra.mxu2 %v786_v61  ;;  %1052 = vmatmul.bf16.gmra.mxu3 %v786_v61  ;;  %v2865_v61 = vld [vmem:[%s3578_s5 + $0xd8] sm:$0xff] }
 0x191   :  { %1460 = vmatmul.bf16.gmra.mxu0 %v1349_v2  ;;  %1478 = vmatmul.bf16.gmra.mxu1 %v1349_v2 }
 0x192   :  { %1606 = vmatpush.bf16.msrb.mxu2 %v2849_v42  ;;  %1667 = vmatpush.bf16.msrb.mxu3 %v2841_v44 }
 0x193   :  { %1830 = vmatpush.bf16.msrb.mxu1 %v2865_v61 }
 0x1a0   :  { %1311 = vmatmul.bf16.vlgmr.msra.gmra.mxu2 %v1204_v60  ;;  %1329 = vmatmul.bf16.vlgmr.msra.gmra.mxu3 %v1204_v60 }
 0x1b0   :  { %1316 = vmatmul.bf16.gmra.mxu2 %v1205_v12  ;;  %1334 = vmatmul.bf16.gmra.mxu3 %v1205_v12 }
 0x1de   :  { %v3379_v13 = vpop.f32.mrf.mxu0  ;;  %v3381_v3 = vpop.f32.mrf.mxu1 }
 0x1e3   :  { %v914_v52 = vpop.f32.mrf.mxu2  ;;  %v932_v17 = vpop.f32.mrf.mxu3 }
 0x1e6   :  { %v3383_v54 = vpop.f32.mrf.mxu0  ;;  %v3385_v55 = vpop.f32.mrf.mxu1 }
 0x1eb   :  { %v3387_v19 = vpop.f32.mrf.mxu2  ;;  %v3389_v20 = vpop.f32.mrf.mxu3 }
 0x1ee   :  { %v3391_v16 = vpop.f32.mrf.mxu0  ;;  %v3393_v21 = vpop.f32.mrf.mxu1 }
 0x1f3   :  { %v3395_v56 = vpop.f32.mrf.mxu2  ;;  %v3397_v25 = vpop.f32.mrf.mxu3 }
 0x1f6   :  { %v1175_v28 = vpop.f32.mrf.mxu0  ;;  %v1193_v4 = vpop.f32.mrf.mxu1 }
 0x1f7   :  { %v2847_v28 = vld [vmem:[%s3578_s5 + $0x48] sm:$0xff] }
 0x1f8   :  { %v2839_v4 = vld [vmem:[%s3578_s5 + $0x8] sm:$0xff] }
 0x1fb   :  { %v921_v5 = vpop.f32.mrf.mxu2  ;;  %v939_v14 = vpop.f32.mrf.mxu3 }
 0x1fc   :  { %v2855_v5 = vld [vmem:[%s3578_s5 + $0x88] sm:$0xff] }
 0x1fd   :  { %v2863_v14 = vld [vmem:[%s3578_s5 + $0xc8] sm:$0xff] }
 0x1fe   :  { %v3399_v63 = vpop.f32.mrf.mxu0  ;;  %v3401_v0 = vpop.f32.mrf.mxu1 }
 0x203   :  { %v1030_v15 = vpop.f32.mrf.mxu2  ;;  %v1048_v39 = vpop.f32.mrf.mxu3 }
 0x204   :  { %v1031_v58 = vadd.f32 %v1030_v15, %v914_v52  ;;  %v1049_v59 = vadd.f32 %v1048_v39, %v932_v17  ;;  %v2840_v52 = vld [vmem:[%s3578_s5 + $0x10] sm:$0xff] }
 0x205   :  { %v2856_v17 = vld [vmem:[%s3578_s5 + $0x90] sm:$0xff]  ;;  %1668 = vmatpush.bf16.msrb.mxu3 %v2840_v52  ;;  %v2883_v52 = vld [vmem:[#allocation11 + $0x28] sm:$0xff] }
 0x206   :  { %v3403_v8 = vpop.f32.mrf.mxu0  ;;  %v3405_v26 = vpop.f32.mrf.mxu1  ;;  %v1195_v48 = vadd.f32 %v3379_v13, %v1031_v58  ;;  %v1196_v7 = vadd.f32 %v3381_v3, %v1049_v59  ;;  %v2848_v3 = vld [vmem:[%s3578_s5 + $0x50] sm:$0xff]  ;;  %1749 = vmatpush.bf16.msrb.mxu0 %v2856_v17 }
 0x207   :  { %1607 = vmatpush.bf16.msrb.mxu2 %v2848_v3  ;;  %v2884_v3 = vld [vmem:[#allocation11 + $0x30] sm:$0xff]  ;;  %v2882_v17 = vld [vmem:[#allocation11 + $0x20] sm:$0xff] }
 0x209   :  { %1669 = vmatpush.bf16.msrb.mxu3 %v2839_v4  ;;  %v2880_v4 = vld [vmem:[#allocation11 + $0x10] sm:$0xff] }
 0x20a   :  { %1750 = vmatpush.bf16.msrb.mxu0 %v2855_v5 }
 0x20b   :  { %v1032_v22 = vpop.f32.mrf.mxu2  ;;  %v1050_v23 = vpop.f32.mrf.mxu3  ;;  %1608 = vmatpush.bf16.msrb.mxu2 %v2847_v28  ;;  %v2881_v28 = vld [vmem:[#allocation11 + $0x18] sm:$0xff] }
 0x20c   :  { %v1033_v60 = vadd.f32 %v1032_v22, %v3387_v19  ;;  %v1051_v51 = vadd.f32 %v1050_v23, %v3389_v20  ;;  %v2864_v19 = vld [vmem:[%s3578_s5 + $0xd0] sm:$0xff] }
 0x20d   :  { %1831 = vmatpush.bf16.msrb.mxu1 %v2864_v19  ;;  %1670 = vmatpush.bf16.msrb.mxu3 %v2838_v30 }
 0x20e   :  { %v3407_v41 = vpop.f32.mrf.mxu0  ;;  %v3409_v9 = vpop.f32.mrf.mxu1  ;;  %v1198_v15 = vadd.f32 %v3385_v55, %v1051_v51  ;;  %v2862_v55 = vld [vmem:[%s3578_s5 + $0xc0] sm:$0xff]  ;;  %v2871_v51 = vld [vmem:[%s3580_s7 + $0x8] sm:$0xff] }
 0x20f   :  { %1609 = vmatpush.bf16.msrb.mxu2 %v2846_v53 }
 0x211   :  { %1832 = vmatpush.bf16.msrb.mxu1 %v2863_v14 }
 0x213   :  { %v3420_v1 = vpop.f32.mrf.mxu2  ;;  %v3422_v40 = vpop.f32.mrf.mxu3 }
 0x215   :  { %1833 = vmatpush.bf16.msrb.mxu1 %v2862_v55  ;;  %v2879_v55 = vld [vmem:[#allocation11 + $0x8] sm:$0xff] }
 0x216   :  { %v1463_v32 = vpop.f32.mrf.mxu0  ;;  %v1481_v47 = vpop.f32.mrf.mxu1 }
 0x217   :  { %v1036_v32 = vadd.f32 %v3420_v1, %v3395_v56  ;;  %v1054_v47 = vadd.f32 %v3422_v40, %v3397_v25  ;;  %v2877_v25 = vld [vmem:[%s3580_s7 + $0x38] sm:$0xff] }
 0x218   :  { %1915 = vmatpush.bf16.msra.mxu2 %v2877_v25 }
 0x219   :  { %v1199_v33 = vadd.f32 %v3391_v16, %v1036_v32  ;;  %v1200_v49 = vadd.f32 %v3393_v21, %v1054_v47  ;;  %v2878_v32 = vld [vmem:[#allocation11] sm:$0xff]  ;;  %v2901_v47 = vld [vmem:[%s3581_s8] ss:$0 sm:$0xff]  ;;  %s3016_s8 = smov [#allocation12]  }
 0x21b   :  { %v1037_v18 = vpop.f32.mrf.mxu2  ;;  %v1055_v6 = vpop.f32.mrf.mxu3 }
 0x21c   :  { %1916 = vmatpush.bf16.msra.mxu2 %v2876_v31  ;;  %v2875_v6 = vld [vmem:[%s3580_s7 + $0x28] sm:$0xff] }
 0x220   :  { %1917 = vmatpush.bf16.msra.mxu2 %v2875_v6 }
 0x223   :  { %v1312_v46 = vpop.f32.mrf.mxu2  ;;  %v1330_v27 = vpop.f32.mrf.mxu3 }
 0x224   :  { %v1339_v2 = vadd.f32 %v1312_v46, %v1195_v48  ;;  %v1340_v50 = vadd.f32 %v1330_v27, %v1196_v7 }
 0x226   :  { %v1483_v12 = vadd.f32 %v3399_v63, %v1339_v2  ;;  %v1484_v13 = vadd.f32 %v3401_v0, %v1340_v50  ;;  %v1197_v0 = vadd.f32 %v3383_v54, %v1033_v60  ;;  %v2854_v54 = vld [vmem:[%s3578_s5 + $0x80] sm:$0xff]  ;;  %v2872_v60 = vld [vmem:[%s3580_s7 + $0x10] sm:$0xff] }
 0x227   :  { %1751 = vmatpush.bf16.msrb.mxu0 %v2854_v54  ;;  %v2874_v50 = vld [vmem:[%s3580_s7 + $0x20] sm:$0xff] }
 0x228   :  { %v1489_v20 = vmax.f32 %v1483_v12, %v1484_v13  ;;  %1918 = vmatpush.bf16.msra.mxu2 %v2874_v50  ;;  %v2870_v12 = vld [vmem:[%s3580_s7] sm:$0xff]  ;;  %v2885_v13 = vld [vmem:[#allocation11 + $0x38] sm:$0xff] }
 0x229   :  { %1998 = vmatpush.bf16.msra.mxu3 %v2885_v13 }
 0x22a   :  { %v1496_v63 = vadd.f32 %v3480_v29, %v1489_v20 }
 0x22b   :  { %v1314_v39 = vpop.f32.mrf.mxu2  ;;  %v1332_v22 = vpop.f32.mrf.mxu3 }
 0x22c   :  { %v1499_v23 = vmax.f32 %v1496_v63, 0.0  ;;  %v1341_v24 = vadd.f32 %v1314_v39, %v1197_v0  ;;  %v1342_v38 = vadd.f32 %v1332_v22, %v1198_v15  ;;  %v2900_v15 = vld [vmem:[%s3579_s6] ss:$0 sm:$0xff] }
 0x22d   :  { %1999 = vmatpush.bf16.msra.mxu3 %v2884_v3 }
 0x22e   :  { %1502 = vst [vmem:[#allocation4] sm:$0xff] %v1499_v23  ;;  %v1485_v10 = vadd.f32 %v3403_v8, %v1341_v24  ;;  %v1486_v45 = vadd.f32 %v3405_v26, %v1342_v38 }
 0x230   :  { %v1490_v11 = vmax.f32 %v1485_v10, %v1486_v45 }
 0x231   :  { %2000 = vmatpush.bf16.msra.mxu3 %v2883_v52 }
 0x232   :  { %v1497_v34 = vadd.f32 %v3480_v29, %v1490_v11 }
 0x233   :  { %v1317_v56 = vpop.f32.mrf.mxu2  ;;  %v1335_v1 = vpop.f32.mrf.mxu3 }
 0x234   :  { %v1500_v8 = vmax.f32 %v1497_v34, 0.0  ;;  %v1343_v40 = vadd.f32 %v1317_v56, %v1199_v33  ;;  %v1344_v26 = vadd.f32 %v1335_v1, %v1200_v49  ;;  %v2011_v49 = vlaneseq  ;;  %v2902_v1 = vld [vmem:[%s3583_s10] ss:$0 sm:$0xff]  ;;  %s2035_s10 = sshll.u32 %s3016_s8, 4  ;;  %s2036_s10 = int_to_ptr.vmem [resolvable:$true] %s2035_s10 }
 0x235   :  { %2001 = vmatpush.bf16.msra.mxu3 %v2882_v17 }
 0x236   :  { %1503 = vst [vmem:[#allocation4 + $0x8] sm:$0xff] %v1500_v8  ;;  %v1487_v18 = vadd.f32 %v3407_v41, %v1343_v40  ;;  %v1488_v16 = vadd.f32 %v3409_v9, %v1344_v26  ;;  %v2012_v56 = vand.u32 127, %v2011_v49 }
 0x238   :  { %v1491_v21 = vmax.f32 %v1487_v18, %v1488_v16  ;;  %vm2013_vm5 = vcmp.lt.s32.totalorder %v2012_v56, 10 }
 0x239   :  { %2002 = vmatpush.bf16.msra.mxu3 %v2881_v28 }
 0x23a   :  { %v1498_v57 = vadd.f32 %v3480_v29, %v1491_v21  ;;  %v2873_v29 = vld [vmem:[%s3580_s7 + $0x18] sm:$0xff] }
 0x23b   :  { %v1319_v58 = vpop.f32.mrf.mxu2  ;;  %v1337_v59 = vpop.f32.mrf.mxu3  ;;  %1919 = vmatpush.bf16.msra.mxu2 %v2873_v29 }
 0x23c   :  { %v1501_v62 = vmax.f32 %v1498_v57, 0.0 }
 0x23d   :  { %v1505_v36 = vld [vmem:[#allocation4] ss:$2 sm:$0xff]  ;;  %v1509_v35 = vld [vmem:[#allocation4 + $0x1] ss:$2 sm:$0xff]  ;;  %2003 = vmatpush.bf16.msra.mxu3 %v2880_v4 }
 0x23e   :  { %v1512_v37 = vmax.f32 %v1505_v36, %v1509_v35  ;;  %1504 = vst [vmem:[#allocation4 + $0x10] sm:$0xff] %v1501_v62 }
 0x23f   :  { %1920 = vmatpush.bf16.msra.mxu2 %v2872_v60 }
 0x240   :  { %1514 = vst [vmem:[#allocation5] sm:$0xff] %v1512_v37 }
 0x241   :  { %2004 = vmatpush.bf16.msra.mxu3 %v2879_v55 }
 0x243   :  { %1921 = vmatpush.bf16.msra.mxu2 %v2871_v51 }
 0x245   :  { %v1507_v41 = vld [vmem:[#allocation4 + $0x10] ss:$2 sm:$0xf]  ;;  %v1511_v48 = vld [vmem:[#allocation4 + $0x11] ss:$2 sm:$0xf]  ;;  %2005 = vmatpush.bf16.msra.mxu3 %v2878_v32 }
 0x246   :  { %v1513_v9 = vmax.f32 %v1507_v41, %v1511_v48 }
 0x247   :  { %1922 = vmatpush.bf16.msra.mxu2 %v2870_v12 }
 0x248   :  { %1515 = vst [vmem:[#allocation5 + $0x8] sm:$0xf] %v1513_v9 }
 0x24f   :  { %v1535_v7 = vld [vmem:[#allocation5 + $0x1] ss:$8 sm:$0x3]  ;;  %v1516_v42 = vld [vmem:[#allocation5] ss:$8 sm:$0x3] }
 0x250   :  { %v1536_v44 = vpack.c.bf16 %v1535_v7, %v1535_v7  ;;  %v1517_v43 = vpack.c.bf16 %v1516_v42, %v1516_v42  ;;  %v1677_v46 = vld [vmem:[#allocation5 + $0x2] ss:$8 sm:$0x3]  ;;  %v1759_v27 = vld [vmem:[#allocation5 + $0x3] ss:$8 sm:$0x3] }
 0x251   :  { %v1678_v61 = vpack.c.bf16 %v1677_v46, %v1677_v46  ;;  %v1760_v2 = vpack.c.bf16 %v1759_v27, %v1759_v27 }
 0x252   :  { %1610 = vmatmul.bf16.vlgmr.msrb.gmra.mxu2 %v1536_v44  ;;  %1671 = vmatmul.bf16.vlgmr.msrb.gmra.mxu3 %v1517_v43 }
 0x253   :  { %1752 = vmatmul.bf16.vlgmr.msrb.gmra.mxu0 %v1678_v61  ;;  %1834 = vmatmul.bf16.vlgmr.msrb.gmra.mxu1 %v1760_v2 }
 0x2d0   :  { %v1753_v19 = vpop.f32.mrf.mxu0  ;;  %v1835_v20 = vpop.f32.mrf.mxu1 }
 0x2d5   :  { %v1611_v5 = vpop.f32.mrf.mxu2  ;;  %v1672_v14 = vpop.f32.mrf.mxu3 }
 0x2d6   :  { %v1673_v63 = vadd.f32 %v1672_v14, %v1611_v5 }
 0x2d8   :  { %v1757_v0 = vadd.f32 %v1753_v19, %v1673_v63  ;;  %v1755_v39 = vpop.f32.mrf.mxu0  ;;  %v1837_v22 = vpop.f32.mrf.mxu1 }
 0x2da   :  { %v1839_v23 = vadd.f32 %v1835_v20, %v1757_v0 }
 0x2dc   :  { %v1844_v24 = vadd.f32 %v2900_v15, %v1839_v23 }
 0x2dd   :  { %v1613_v38 = vpop.f32.mrf.mxu2  ;;  %v1674_v53 = vpop.f32.mrf.mxu3 }
 0x2de   :  { %v1845_v30 = vmax.f32 %v1844_v24, 0.0 }
 0x2e0   :  { %v1846_v54 = vpack.c.bf16 %v1845_v30, %v1845_v30 }
 0x2e2   :  { %1923 = vmatmul.bf16.vlgmr.msra.gmra.mxu2 %v1846_v54 }
 0x365   :  { %v1924_v10 = vpop.f32.mrf.mxu2 }
 0x366   :  { %v1925_v45 = vadd.f32 %v2901_v47, %v1924_v10 }
 0x368   :  { %v1928_v11 = vmax.f32 %v1925_v45, 0.0 }
 0x36a   :  { %v1929_v34 = vpack.c.bf16 %v1928_v11, %v1928_v11 }
 0x36c   :  { %2006 = vmatmul.bf16.vlgmr.msra.gmra.mxu3 %v1929_v34 }
 0x36d   :  { %v1926_v33 = vpop.f32.mrf.mxu2 }
 0x3ef   :  { %v2007_v25 = vpop.f32.mrf.mxu3 }
 0x3f0   :  { %v2008_v8 = vadd.f32 %v2902_v1, %v2007_v25 }
 0x3f2   :  { %v2014_v40 = vsel %vm2013_vm5, %v2008_v8, -inf }
 0x3f3   :  { %v2016_v26 = vsel %vm2015_vm6, %v2014_v40, -inf }
 0x3f4   :  { %2017 = vmax.xlane.f32.xlu0 %v2016_v26 }
 0x3f7   :  { %v2009_v31 = vpop.f32.mrf.mxu3 }
 0x467   :  { %v2018_v18 = vpop.xlane.xlu0 %2017 }
 0x468   :  { %v2019_v16 = vsub.f32 %v2014_v40, %v2018_v18  ;;  %v2027_v62 = vsub.f32 %v2008_v8, %v2018_v18 }
 0x46a   :  { %v2020_v21 = vmul.f32 1.442695, %v2019_v16 }
 0x46c   :  { %2903 = vpow2.f32 %v2020_v21 }
 0x472   :  { %v2904_v6 = vpop.eup %2903 }
 0x473   :  { %v2022_v57 = vsel %vm2015_vm6, %v2904_v6, 0.0 }
 0x474   :  { %2023 = vadd.xlane.f32.xlu0 %v2022_v57 }
 0x4e7   :  { %v2024_v58 = vpop.xlane.xlu0 %2023 }
 0x4e8   :  { %2905 = vlog2.f32 %v2024_v58 }
 0x4ee   :  { %v2906_v59 = vpop.eup %2905 }
 0x4ef   :  { %v2026_v36 = vmul.f32 0.6931472, %v2906_v59 }
 0x4f1   :  { %v2028_v35 = vsub.f32 %v2027_v62, %v2026_v36 }
 0x4f3   :  { %2029 = vst [vmem:[#allocation12] sm:$0x3] %v2028_v35 }
 0x4f4   :  { %2040 = dma.vmem_to_hbm [thread:$0]  %s2036_s10, 32, %s2038_s21, [#allocation8]  }
 0x4f5   :  { %3007 = dma.done.wait [#allocation8], 32  }
 0x4f6   :  { %3008 = vsyncadd [#allocation8], 4294967264 }
 0x4f7   :  { %2045 = vsyncpa [#allocation7], 1 }
 0x4f8   :  { %2046 = vsyncpa [#allocation10], 1 }
 0x4f9   :  { %2047 = vsyncpa [#allocation8], 1 }

</bundles_post_ra>
